<compile_context>
chip_gen: v7x
topology: tpu7x:2x2x1
jax: 0.10.0
libtpu: 0.0.40
codegen_flags: <defaults>
</compile_context>

<pallas_src>
import jax
import jax.numpy as jnp
from jax.experimental import pallas as pl
from jax.experimental.pallas import tpu as pltpu


_VMEM_LIMIT = 40 * 1024 * 1024  # headroom under v7x's 64 MiB physical VMEM


# ---------------------------------------------------------------------------
# Pallas kernel 1: uint8 centered sum / sum-of-squares, resident accumulator
# ---------------------------------------------------------------------------
def _u8_stats_kernel(x_ref, s_ref, q_ref):
    """x_ref: (tile_r, 128) int32 words, 4 packed uint8 bytes per word."""
    @pl.when(pl.program_id(0) == 0)
    def _():
        s_ref[...] = jnp.zeros_like(s_ref)
        q_ref[...] = jnp.zeros_like(q_ref)

    v = x_ref[...]
    s = jnp.zeros((1, 128), jnp.int32)
    q = jnp.zeros((1, 128), jnp.int32)
    for k in range(4):                                 # int32 accumulation
        byte = ((v >> (8 * k)) & 0xFF) - 128           # centered: [-128, 127]
        s = s + jnp.sum(byte, axis=0, keepdims=True)
        q = q + jnp.sum(byte * byte, axis=0, keepdims=True)
    s_ref[...] += s.astype(jnp.float32)
    q_ref[...] += q.astype(jnp.float32)


def u8_centered_stats(x_u8):
    """One HBM pass: returns (sum(x-128), sum((x-128)^2), n) over all bytes."""
    flat = x_u8.reshape(-1)
    n = flat.shape[0]
    row_bytes = 512                                    # 128 lanes * 4 bytes
    r_raw = -(-n // row_bytes)
    tile_r = min(2048, -(-r_raw // 8) * 8)
    r_pad = -(-r_raw // tile_r) * tile_r
    pad_n = r_pad * row_bytes - n
    if pad_n:
        flat = jnp.pad(flat, (0, pad_n), constant_values=128)  # centered -> 0
    xi32 = jax.lax.bitcast_convert_type(flat.reshape(r_pad, 128, 4), jnp.int32)
    nblk = r_pad // tile_r

    s_out, q_out = pl.pallas_call(
        _u8_stats_kernel,
        out_shape=(jax.ShapeDtypeStruct((1, 128), jnp.float32),
                   jax.ShapeDtypeStruct((1, 128), jnp.float32)),
        grid_spec=pltpu.PrefetchScalarGridSpec(
            num_scalar_prefetch=0,
            grid=(nblk,),
            in_specs=[pl.BlockSpec((tile_r, 128), lambda i: (i, 0))],
            out_specs=[pl.BlockSpec((1, 128), lambda i: (0, 0)),
                       pl.BlockSpec((1, 128), lambda i: (0, 0))]),
        compiler_params=pltpu.CompilerParams(
            dimension_semantics=("arbitrary",),
            vmem_limit_bytes=_VMEM_LIMIT),
    )(xi32)
    return jnp.sum(s_out), jnp.sum(q_out), n


# ---------------------------------------------------------------------------
# Pallas kernel 2: conv(3x3,s2,p1) as matmul + bias + ReLU + 2x2 max-pool.
# Grid = (output row-blocks ["parallel"], 4 pool phases ["arbitrary"]).
# Pool = max-accumulation over the phase axis into an f32 VMEM scratch.
# Output rows are lane-packed to a full 128-lane width (block-diag weights).
# ---------------------------------------------------------------------------
def _conv_pool_kernel(x_ref, w_ref, b_ref, o_ref, acc_ref):
    p = pl.program_id(1)
    y = jnp.dot(x_ref[...], w_ref[...], preferred_element_type=jnp.float32)

    @pl.when(p == 0)
    def _():
        acc_ref[...] = y

    @pl.when(p != 0)
    def _():
        acc_ref[...] = jnp.maximum(acc_ref[...], y)

    @pl.when(p == pl.num_programs(1) - 1)
    def _():
        o_ref[...] = jnp.maximum(acc_ref[...] + b_ref[...], 0.0).astype(o_ref.dtype)


def _conv_pool_proj_kernel(x_ref, w_ref, b_ref, pw_ref, pb_ref, o_ref, acc_ref):
    """Same as above, plus a fused Flatten + Linear + ReLU projector epilogue
    (valid when the pooled spatial size is 1x1 so flatten == identity)."""
    p = pl.program_id(1)
    y = jnp.dot(x_ref[...], w_ref[...], preferred_element_type=jnp.float32)

    @pl.when(p == 0)
    def _():
        acc_ref[...] = y

    @pl.when(p != 0)
    def _():
        acc_ref[...] = jnp.maximum(acc_ref[...], y)

    @pl.when(p == pl.num_programs(1) - 1)
    def _():
        h = jnp.maximum(acc_ref[...] + b_ref[...], 0.0).astype(pw_ref.dtype)
        o_ref[...] = jnp.maximum(
            jnp.dot(h, pw_ref[...], preferred_element_type=jnp.float32)
            + pb_ref[...], 0.0).astype(o_ref.dtype)


def _pick_tile_rows(m_pad, target):
    """m_pad is a multiple of 16.  Largest multiple-of-16 divisor <= target,
    keeping >= 2 row-blocks for large m so the 'parallel' grid axis can split
    across the two TensorCores of a v7x chip."""
    if m_pad <= 16:
        return m_pad
    eff = max(16, min(target, m_pad // 2 if m_pad >= 64 else m_pad))
    best = 16
    t = 32
    while t <= eff:
        if m_pad % t == 0:
            best = t
        t += 16
    return best


# ---------------------------------------------------------------------------
# Plain-JAX glue: pool-phase-separated patch extraction (single XLA producer)
# ---------------------------------------------------------------------------
def _phase_patches(xpad, hp, wp):
    """xpad: (B, H+2, W+2, C) -> (4, B, hp, wp, 9*C); axis 0 is the pool phase
    (conv-row parity, conv-col parity) inside each 2x2 pool window."""
    b, _, _, c = xpad.shape
    phases = []
    for pa in (0, 1):
        for pc in (0, 1):
            taps = []
            for dh in range(3):
                for dw in range(3):
                    r0, c0 = 2 * pa + dh, 2 * pc + dw
                    taps.append(jax.lax.slice(
                        xpad,
                        (0, r0, c0, 0),
                        (b, r0 + 4 * (hp - 1) + 1, c0 + 4 * (wp - 1) + 1, c),
                        (1, 4, 4, 1)))                    # (B, hp, wp, C)
            phases.append(jnp.stack(taps, axis=3))        # (B, hp, wp, 9, C)
    return jnp.stack(phases, axis=0).reshape(4, b, hp, wp, 9 * c)


def conv_relu_pool_stage(x_nhwc, w_hwio, bias, *, target_rows,
                         out_dtype=jnp.bfloat16, proj_w=None, proj_b=None):
    """Conv2d(k=3,s=2,p=1) + ReLU + MaxPool2d(2) as one Pallas call.
    Optionally fuses Flatten + Linear + ReLU when pooled spatial is 1x1."""
    b, h, w, cin = x_nhwc.shape
    kh, kw, cin_w, cout = w_hwio.shape
    assert (kh, kw, cin_w) == (3, 3, cin)
    assert h % 4 == 0 and w % 4 == 0, "spatial dims must be divisible by 4"
    hp, wp = h // 4, w // 4

    # lane packing: `pack` adjacent pooled columns per 128-lane output row
    pack = 1
    while pack * 2 * cout <= 128 and wp % (pack * 2) == 0:
        pack *= 2
    wq = wp // pack
    K, Kp, Np = 9 * cin, pack * 9 * cin, pack * cout
    Mq = b * hp * wq
    Mq_pad = -(-Mq // 16) * 16

    fuse_proj = proj_w is not None
    if fuse_proj:
        assert hp == 1 and wp == 1 and pack == 1, "projector fusion needs 1x1"

    # --- patch producer (pad with exact 0.0; input is already normalized) ---
    xpad = jax.lax.pad(x_nhwc, jnp.zeros((), x_nhwc.dtype),
                       [(0, 0, 0), (1, 1, 0), (1, 1, 0), (0, 0, 0)])
    lhs = _phase_patches(xpad, hp, wp).reshape(4, Mq, Kp)
    if Mq_pad != Mq:
        lhs = jnp.pad(lhs, ((0, 0), (0, Mq_pad - Mq), (0, 0)))
    lhs = lhs.reshape(4 * Mq_pad, Kp)

    # --- block-diagonal weights + tiled bias for the lane packing -----------
    w2d = w_hwio.reshape(K, cout).astype(jnp.bfloat16)
    if pack > 1:
        eye = jnp.eye(pack, dtype=w2d.dtype)
        wmat = jnp.einsum("tu,kc->tkuc", eye, w2d).reshape(Kp, Np)
    else:
        wmat = w2d
    bias_row = jnp.tile(bias.astype(jnp.float32).reshape(1, cout), (1, pack))

    tile = _pick_tile_rows(Mq_pad, target_rows)
    nblk = Mq_pad // tile
    grid = (nblk, 4)

    n_out = proj_w.shape[1] if fuse_proj else Np
    out_dt = jnp.float32 if fuse_proj else out_dtype
    kern = _conv_pool_proj_kernel if fuse_proj else _conv_pool_kernel

    in_specs = [
        pl.BlockSpec((tile, Kp), lambda i, p, nb=nblk: (p * nb + i, 0)),
        pl.BlockSpec((Kp, Np), lambda i, p: (0, 0)),
        pl.BlockSpec((1, Np), lambda i, p: (0, 0)),
    ]
    args = [lhs, wmat, bias_row]
    if fuse_proj:
        in_specs += [
            pl.BlockSpec((Np, n_out), lambda i, p: (0, 0)),
            pl.BlockSpec((1, n_out), lambda i, p: (0, 0)),
        ]
        args += [proj_w.astype(jnp.bfloat16),
                 proj_b.astype(jnp.float32).reshape(1, n_out)]

    flops = 2 * 4 * Mq_pad * Kp * Np
    if fuse_proj:
        flops += 2 * Mq_pad * Np * n_out
    cost = pl.CostEstimate(
        flops=int(flops), transcendentals=0,
        bytes_accessed=int(4 * Mq_pad * Kp * 2 + Kp * Np * 2
                           + Mq_pad * n_out * jnp.dtype(out_dt).itemsize))

    out = pl.pallas_call(
        kern,
        out_shape=jax.ShapeDtypeStruct((Mq_pad, n_out), out_dt),
        grid_spec=pltpu.PrefetchScalarGridSpec(
            num_scalar_prefetch=0,
            grid=grid,
            in_specs=in_specs,
            out_specs=pl.BlockSpec((tile, n_out), lambda i, p: (i, 0)),
            scratch_shapes=[pltpu.VMEM((tile, Np), jnp.float32)]),
        compiler_params=pltpu.CompilerParams(
            dimension_semantics=("parallel", "arbitrary"),
            vmem_limit_bytes=_VMEM_LIMIT),
        cost_estimate=cost,
    )(*args)

    if fuse_proj:
        return out[:Mq]                                  # (B, feature_dim)
    # (Mq, pack*Cout) row-major == NHWC (B, hp, wp, Cout): free reshape.
    return out[:Mq].reshape(b, hp, wp, cout)


# ---------------------------------------------------------------------------
# Standalone projector (fallback when the final spatial size is not 1x1)
# ---------------------------------------------------------------------------
def _linear_relu_kernel(x_ref, w_ref, b_ref, o_ref):
    o_ref[...] = jnp.maximum(
        jnp.dot(x_ref[...], w_ref[...], preferred_element_type=jnp.float32)
        + b_ref[...], 0.0).astype(o_ref.dtype)


def linear_relu(x, w, bias, *, target_rows=2048, out_dtype=jnp.float32):
    m, k = x.shape
    n = w.shape[1]
    m_pad = -(-m // 16) * 16
    if m_pad != m:
        x = jnp.pad(x, ((0, m_pad - m), (0, 0)))
    tile = _pick_tile_rows(m_pad, target_rows)
    out = pl.pallas_call(
        _linear_relu_kernel,
        out_shape=jax.ShapeDtypeStruct((m_pad, n), out_dtype),
        grid_spec=pltpu.PrefetchScalarGridSpec(
            num_scalar_prefetch=0,
            grid=(m_pad // tile,),
            in_specs=[pl.BlockSpec((tile, k), lambda i: (i, 0)),
                      pl.BlockSpec((k, n), lambda i: (0, 0)),
                      pl.BlockSpec((1, n), lambda i: (0, 0))],
            out_specs=pl.BlockSpec((tile, n), lambda i: (i, 0))),
        compiler_params=pltpu.CompilerParams(
            dimension_semantics=("parallel",),
            vmem_limit_bytes=_VMEM_LIMIT),
    )(x.astype(jnp.bfloat16), w.astype(jnp.bfloat16),
      bias.astype(jnp.float32).reshape(1, n))
    return out[:m]


# ---------------------------------------------------------------------------
# Forward pass (mirrors CNNEncoder.forward)
# ---------------------------------------------------------------------------
def cnn_encoder_forward(x_nchw_u8, params):
    b = x_nchw_u8.shape[0]

    # --- VisionEncoder.preprocess statistics (one fused uint8 pass) --------
    cs1, cs2, n = u8_centered_stats(x_nchw_u8)
    n_f = jnp.float32(n)
    mean_c = cs1 / n_f                                  # mean of (x - 128)
    var_u = (cs2 - cs1 * cs1 / n_f) / (n_f - 1.0)       # unbiased (torch .std)
    inv_std = jax.lax.rsqrt(var_u)

    # /255*2-1 followed by global standardization == standardization of the
    # raw bytes (standardization is affine-invariant).  Normalize in f32, cast
    # to bf16, then pad with exact 0.0 => exact nn.Conv2d zero-padding.  The
    # elementwise normalize fuses into the XLA patch producer of conv0.
    x_nhwc = jnp.transpose(x_nchw_u8, (0, 2, 3, 1)).astype(jnp.float32)
    x_norm = ((x_nhwc - 128.0 - mean_c) * inv_std).astype(jnp.bfloat16)

    # --- encoder: 3 x fused (conv s2 p1 + relu + maxpool2) kernels ----------
    feat = conv_relu_pool_stage(x_norm, params["conv0_w"], params["conv0_b"],
                                target_rows=8192)
    feat = conv_relu_pool_stage(feat, params["conv1_w"], params["conv1_b"],
                                target_rows=4096)

    _, h2, w2, _ = feat.shape
    if h2 == 4 and w2 == 4:
        # conv2 + Flatten + projector fused (flatten is identity at 1x1)
        return conv_relu_pool_stage(feat, params["conv2_w"], params["conv2_b"],
                                    target_rows=2048,
                                    proj_w=params["proj_w"],
                                    proj_b=params["proj_b"])

    feat = conv_relu_pool_stage(feat, params["conv2_w"], params["conv2_b"],
                                target_rows=2048)
    # Flatten (PyTorch flattens NCHW => channel-major)
    flat = jnp.transpose(feat, (0, 3, 1, 2)).reshape(b, -1).astype(jnp.bfloat16)
    return linear_relu(flat, params["proj_w"], params["proj_b"])


# ---------------------------------------------------------------------------
# Deterministic parameter init (shapes from CNNEncoder._build_encoder)
# ---------------------------------------------------------------------------
def init_params(key, in_ch=3, channels=(32, 64, 128), ksize=3,
                flat_sz=128, feature_dim=128):
    params = {}
    keys = jax.random.split(key, len(channels) + 1)
    for i, out_ch in enumerate(channels):
        fan_in = in_ch * ksize * ksize
        bound = float(1.0 / (fan_in ** 0.5))
        wk, bk = jax.random.split(keys[i])
        # HWIO layout; equivalent to torch (O, I, kH, kW).transpose(2, 3, 1, 0)
        params[f"conv{i}_w"] = jax.random.uniform(
            wk, (ksize, ksize, in_ch, out_ch), jnp.float32, -bound, bound)
        params[f"conv{i}_b"] = jax.random.uniform(
            bk, (out_ch,), jnp.float32, -bound, bound)
        in_ch = out_ch
    bound = float(1.0 / (flat_sz ** 0.5))
    wk, bk = jax.random.split(keys[-1])
    params["proj_w"] = jax.random.uniform(
        wk, (flat_sz, feature_dim), jnp.float32, -bound, bound)
    params["proj_b"] = jax.random.uniform(
        bk, (feature_dim,), jnp.float32, -bound, bound)
    return params


if __name__ == "__main__":
    key = jax.random.PRNGKey(0)
    k_x, k_p = jax.random.split(key)

    # obs_space: Box(low=0, high=255, shape=(B, 3, 64, 64), dtype=uint8)
    B, C, H, W = 2, 3, 64, 64
    x = jax.random.randint(k_x, (B, C, H, W), 0, 256,
                           dtype=jnp.int32).astype(jnp.uint8)

    # flat size implied by the architecture (each stage divides spatial by 4)
    sh, sw = H, W
    for _ in range(3):
        sh, sw = sh // 4, sw // 4
    flat_sz = sh * sw * 128

    params = init_params(k_p, in_ch=C, flat_sz=flat_sz, feature_dim=128)

    out = jax.block_until_ready(jax.jit(cnn_encoder_forward)(x, params))

    assert out.shape == (B, 128), out.shape
    assert out.dtype == jnp.float32
    assert bool(jnp.all(out >= 0.0))   # final ReLU
    assert bool(jnp.all(jnp.isfinite(out)))
    print("KERNEL_OK")
</pallas_src>

<mosaic_0001>
module attributes {stable_mosaic.version = 11 : i64} {
  func.func @_u8_stats_kernel(%arg0: i32, %arg1: memref<48x128xi32, #tpu.memory_space<vmem>>, %arg2: memref<1x128xf32, #tpu.memory_space<vmem>>, %arg3: memref<1x128xf32, #tpu.memory_space<vmem>>) attributes {dimension_semantics = [#tpu.dimension_semantics<arbitrary>], iteration_bounds = array<i64: 1>, scalar_prefetch = 0 : i64, scratch_operands = 0 : i64, tpu.core_type = #tpu.core_type<tc>, window_params = [{transform_indices = @transform_0, window_bounds = array<i64: 48, 128>}, {pipeline_mode = #tpu.pipeline_mode<synchronous>, transform_indices = @transform_1, window_bounds = array<i64: 1, 128>}, {pipeline_mode = #tpu.pipeline_mode<synchronous>, transform_indices = @transform_2, window_bounds = array<i64: 1, 128>}]} {
    %c0_i32 = arith.constant 0 : i32
    %0 = arith.cmpi eq, %arg0, %c0_i32 : i32
    %1 = arith.extui %0 : i1 to i32
    %c0_i32_0 = arith.constant 0 : i32
    %2 = arith.cmpi ne, %1, %c0_i32_0 : i32
    scf.if %2 {
      %cst_26 = arith.constant 0.000000e+00 : f32
      %66 = vector.broadcast %cst_26 : f32 to vector<1x128xf32>
      %c0_27 = arith.constant 0 : index
      %c0_28 = arith.constant 0 : index
      %67 = vector.load %arg2[%c0_27, %c0_28] : memref<1x128xf32, #tpu.memory_space<vmem>>, vector<1x128xf32>
      tpu.vector_store %arg2[%c0_27, %c0_28], %66 {strides = array<i32>} : memref<1x128xf32, #tpu.memory_space<vmem>>, vector<1x128xf32>,
      %cst_29 = arith.constant 0.000000e+00 : f32
      %68 = vector.broadcast %cst_29 : f32 to vector<1x128xf32>
      %c0_30 = arith.constant 0 : index
      %c0_31 = arith.constant 0 : index
      %69 = vector.load %arg3[%c0_30, %c0_31] : memref<1x128xf32, #tpu.memory_space<vmem>>, vector<1x128xf32>
      tpu.vector_store %arg3[%c0_30, %c0_31], %68 {strides = array<i32>} : memref<1x128xf32, #tpu.memory_space<vmem>>, vector<1x128xf32>,
    } else {
    }
    %c0 = arith.constant 0 : index
    %c0_1 = arith.constant 0 : index
    %3 = vector.load %arg1[%c0, %c0_1] : memref<48x128xi32, #tpu.memory_space<vmem>>, vector<48x128xi32>
    %c0_i32_2 = arith.constant 0 : i32
    %4 = vector.broadcast %c0_i32_2 : i32 to vector<1x128xi32>
    %c0_i32_3 = arith.constant 0 : i32
    %5 = vector.broadcast %c0_i32_3 : i32 to vector<1x128xi32>
    %c0_i32_4 = arith.constant 0 : i32
    %6 = vector.broadcast %c0_i32_4 : i32 to vector<48x128xi32>
    %7 = arith.shrsi %3, %6 : vector<48x128xi32>
    %c255_i32 = arith.constant 255 : i32
    %8 = vector.broadcast %c255_i32 : i32 to vector<48x128xi32>
    %9 = arith.andi %7, %8 : vector<48x128xi32>
    %c128_i32 = arith.constant 128 : i32
    %10 = vector.broadcast %c128_i32 : i32 to vector<48x128xi32>
    %11 = arith.subi %9, %10 : vector<48x128xi32>
    %cst = arith.constant dense<0> : vector<128xi32>
    %12 = vector.multi_reduction <add>, %11, %cst [0] : vector<48x128xi32> to vector<128xi32>
    %13 = vector.shape_cast %12 : vector<128xi32> to vector<1x128xi32>
    %14 = arith.addi %4, %13 : vector<1x128xi32>
    %15 = arith.muli %11, %11 : vector<48x128xi32>
    %cst_5 = arith.constant dense<0> : vector<128xi32>
    %16 = vector.multi_reduction <add>, %15, %cst_5 [0] : vector<48x128xi32> to vector<128xi32>
    %17 = vector.shape_cast %16 : vector<128xi32> to vector<1x128xi32>
    %18 = arith.addi %5, %17 : vector<1x128xi32>
    %c8_i32 = arith.constant 8 : i32
    %19 = vector.broadcast %c8_i32 : i32 to vector<48x128xi32>
    %20 = arith.shrsi %3, %19 : vector<48x128xi32>
    %c255_i32_6 = arith.constant 255 : i32
    %21 = vector.broadcast %c255_i32_6 : i32 to vector<48x128xi32>
    %22 = arith.andi %20, %21 : vector<48x128xi32>
    %c128_i32_7 = arith.constant 128 : i32
    %23 = vector.broadcast %c128_i32_7 : i32 to vector<48x128xi32>
    %24 = arith.subi %22, %23 : vector<48x128xi32>
    %cst_8 = arith.constant dense<0> : vector<128xi32>
    %25 = vector.multi_reduction <add>, %24, %cst_8 [0] : vector<48x128xi32> to vector<128xi32>
    %26 = vector.shape_cast %25 : vector<128xi32> to vector<1x128xi32>
    %27 = arith.addi %14, %26 : vector<1x128xi32>
    %28 = arith.muli %24, %24 : vector<48x128xi32>
    %cst_9 = arith.constant dense<0> : vector<128xi32>
    %29 = vector.multi_reduction <add>, %28, %cst_9 [0] : vector<48x128xi32> to vector<128xi32>
    %30 = vector.shape_cast %29 : vector<128xi32> to vector<1x128xi32>
    %31 = arith.addi %18, %30 : vector<1x128xi32>
    %c16_i32 = arith.constant 16 : i32
    %32 = vector.broadcast %c16_i32 : i32 to vector<48x128xi32>
    %33 = arith.shrsi %3, %32 : vector<48x128xi32>
    %c255_i32_10 = arith.constant 255 : i32
    %34 = vector.broadcast %c255_i32_10 : i32 to vector<48x128xi32>
    %35 = arith.andi %33, %34 : vector<48x128xi32>
    %c128_i32_11 = arith.constant 128 : i32
    %36 = vector.broadcast %c128_i32_11 : i32 to vector<48x128xi32>
    %37 = arith.subi %35, %36 : vector<48x128xi32>
    %cst_12 = arith.constant dense<0> : vector<128xi32>
    %38 = vector.multi_reduction <add>, %37, %cst_12 [0] : vector<48x128xi32> to vector<128xi32>
    %39 = vector.shape_cast %38 : vector<128xi32> to vector<1x128xi32>
    %40 = arith.addi %27, %39 : vector<1x128xi32>
    %41 = arith.muli %37, %37 : vector<48x128xi32>
    %cst_13 = arith.constant dense<0> : vector<128xi32>
    %42 = vector.multi_reduction <add>, %41, %cst_13 [0] : vector<48x128xi32> to vector<128xi32>
    %43 = vector.shape_cast %42 : vector<128xi32> to vector<1x128xi32>
    %44 = arith.addi %31, %43 : vector<1x128xi32>
    %c24_i32 = arith.constant 24 : i32
    %45 = vector.broadcast %c24_i32 : i32 to vector<48x128xi32>
    %46 = arith.shrsi %3, %45 : vector<48x128xi32>
    %c255_i32_14 = arith.constant 255 : i32
    %47 = vector.broadcast %c255_i32_14 : i32 to vector<48x128xi32>
    %48 = arith.andi %46, %47 : vector<48x128xi32>
    %c128_i32_15 = arith.constant 128 : i32
    %49 = vector.broadcast %c128_i32_15 : i32 to vector<48x128xi32>
    %50 = arith.subi %48, %49 : vector<48x128xi32>
    %cst_16 = arith.constant dense<0> : vector<128xi32>
    %51 = vector.multi_reduction <add>, %50, %cst_16 [0] : vector<48x128xi32> to vector<128xi32>
    %52 = vector.shape_cast %51 : vector<128xi32> to vector<1x128xi32>
    %53 = arith.addi %40, %52 : vector<1x128xi32>
    %54 = arith.muli %50, %50 : vector<48x128xi32>
    %cst_17 = arith.constant dense<0> : vector<128xi32>
    %55 = vector.multi_reduction <add>, %54, %cst_17 [0] : vector<48x128xi32> to vector<128xi32>
    %56 = vector.shape_cast %55 : vector<128xi32> to vector<1x128xi32>
    %57 = arith.addi %44, %56 : vector<1x128xi32>
    %c0_18 = arith.constant 0 : index
    %c0_19 = arith.constant 0 : index
    %58 = vector.load %arg2[%c0_18, %c0_19] : memref<1x128xf32, #tpu.memory_space<vmem>>, vector<1x128xf32>
    %59 = arith.sitofp %53 : vector<1x128xi32> to vector<1x128xf32>
    %60 = arith.addf %58, %59 : vector<1x128xf32>
    %c0_20 = arith.constant 0 : index
    %c0_21 = arith.constant 0 : index
    %61 = vector.load %arg2[%c0_20, %c0_21] : memref<1x128xf32, #tpu.memory_space<vmem>>, vector<1x128xf32>
    tpu.vector_store %arg2[%c0_20, %c0_21], %60 {strides = array<i32>} : memref<1x128xf32, #tpu.memory_space<vmem>>, vector<1x128xf32>,
    %c0_22 = arith.constant 0 : index
    %c0_23 = arith.constant 0 : index
    %62 = vector.load %arg3[%c0_22, %c0_23] : memref<1x128xf32, #tpu.memory_space<vmem>>, vector<1x128xf32>
    %63 = arith.sitofp %57 : vector<1x128xi32> to vector<1x128xf32>
    %64 = arith.addf %62, %63 : vector<1x128xf32>
    %c0_24 = arith.constant 0 : index
    %c0_25 = arith.constant 0 : index
    %65 = vector.load %arg3[%c0_24, %c0_25] : memref<1x128xf32, #tpu.memory_space<vmem>>, vector<1x128xf32>
    tpu.vector_store %arg3[%c0_24, %c0_25], %64 {strides = array<i32>} : memref<1x128xf32, #tpu.memory_space<vmem>>, vector<1x128xf32>,
    return
  }
  func.func @transform_0(%arg0: i32) -> (i32, i32) {
    %c0_i32 = arith.constant 0 : i32
    %c0_i32_0 = arith.constant 0 : i32
    return %arg0, %c0_i32 : i32, i32
  }
  func.func @transform_1(%arg0: i32) -> (i32, i32) {
    %c0_i32 = arith.constant 0 : i32
    %c0_i32_0 = arith.constant 0 : i32
    %c0_i32_1 = arith.constant 0 : i32
    return %c0_i32, %c0_i32_0 : i32, i32
  }
  func.func @transform_2(%arg0: i32) -> (i32, i32) {
    %c0_i32 = arith.constant 0 : i32
    %c0_i32_0 = arith.constant 0 : i32
    %c0_i32_1 = arith.constant 0 : i32
    return %c0_i32, %c0_i32_0 : i32, i32
  }
}

module attributes {stable_mosaic.version = 11 : i64} {
  func.func @_conv_pool_kernel(%arg0: i32, %arg1: i32, %arg2: memref<64x108xbf16, #tpu.memory_space<vmem>>, %arg3: memref<108x128xbf16, #tpu.memory_space<vmem>>, %arg4: memref<1x128xf32, #tpu.memory_space<vmem>>, %arg5: memref<64x128xbf16, #tpu.memory_space<vmem>>, %arg6: memref<64x128xf32, #tpu.memory_space<vmem>>) attributes {dimension_semantics = [#tpu.dimension_semantics<parallel>, #tpu.dimension_semantics<arbitrary>], iteration_bounds = array<i64: 2, 4>, scalar_prefetch = 0 : i64, scratch_operands = 1 : i64, tpu.core_type = #tpu.core_type<tc>, window_params = [{transform_indices = @transform_0, window_bounds = array<i64: 64, 108>}, {pipeline_mode = #tpu.pipeline_mode<synchronous>, transform_indices = @transform_1, window_bounds = array<i64: 108, 128>}, {pipeline_mode = #tpu.pipeline_mode<synchronous>, transform_indices = @transform_2, window_bounds = array<i64: 1, 128>}, {transform_indices = @transform_3, window_bounds = array<i64: 64, 128>}]} {
    %c0 = arith.constant 0 : index
    %c0_0 = arith.constant 0 : index
    %0 = vector.load %arg2[%c0, %c0_0] : memref<64x108xbf16, #tpu.memory_space<vmem>>, vector<64x108xbf16>
    %c0_1 = arith.constant 0 : index
    %c0_2 = arith.constant 0 : index
    %1 = vector.load %arg3[%c0_1, %c0_2] : memref<108x128xbf16, #tpu.memory_space<vmem>>, vector<108x128xbf16>
    %cst = arith.constant dense<0.000000e+00> : vector<64x128xf32>
    %2 = tpu.matmul %0, %1, %cst {dimension_numbers = #tpu.dot_dimension_numbers<[1], [0], [0], [1], [0, 0, 1, 1], [], []>} : vector<64x108xbf16>, vector<108x128xbf16>, vector<64x128xf32> -> vector<64x128xf32>
    %c0_i32 = arith.constant 0 : i32
    %3 = arith.cmpi eq, %arg1, %c0_i32 : i32
    %4 = arith.extui %3 : i1 to i32
    %c0_i32_3 = arith.constant 0 : i32
    %5 = arith.cmpi ne, %4, %c0_i32_3 : i32
    scf.if %5 {
      %c0_7 = arith.constant 0 : index
      %c0_8 = arith.constant 0 : index
      %12 = vector.load %arg6[%c0_7, %c0_8] : memref<64x128xf32, #tpu.memory_space<vmem>>, vector<64x128xf32>
      tpu.vector_store %arg6[%c0_7, %c0_8], %2 {strides = array<i32>} : memref<64x128xf32, #tpu.memory_space<vmem>>, vector<64x128xf32>,
    } else {
    }
    %c0_i32_4 = arith.constant 0 : i32
    %6 = arith.cmpi ne, %arg1, %c0_i32_4 : i32
    %7 = arith.extui %6 : i1 to i32
    %c0_i32_5 = arith.constant 0 : i32
    %8 = arith.cmpi ne, %7, %c0_i32_5 : i32
    scf.if %8 {
      %c0_7 = arith.constant 0 : index
      %c0_8 = arith.constant 0 : index
      %12 = vector.load %arg6[%c0_7, %c0_8] : memref<64x128xf32, #tpu.memory_space<vmem>>, vector<64x128xf32>
      %13 = arith.maximumf %12, %2 : vector<64x128xf32>
      %c0_9 = arith.constant 0 : index
      %c0_10 = arith.constant 0 : index
      %14 = vector.load %arg6[%c0_9, %c0_10] : memref<64x128xf32, #tpu.memory_space<vmem>>, vector<64x128xf32>
      tpu.vector_store %arg6[%c0_9, %c0_10], %13 {strides = array<i32>} : memref<64x128xf32, #tpu.memory_space<vmem>>, vector<64x128xf32>,
    } else {
    }
    %c3_i32 = arith.constant 3 : i32
    %9 = arith.cmpi eq, %arg1, %c3_i32 : i32
    %10 = arith.extui %9 : i1 to i32
    %c0_i32_6 = arith.constant 0 : i32
    %11 = arith.cmpi ne, %10, %c0_i32_6 : i32
    scf.if %11 {
      %c0_7 = arith.constant 0 : index
      %c0_8 = arith.constant 0 : index
      %12 = vector.load %arg6[%c0_7, %c0_8] : memref<64x128xf32, #tpu.memory_space<vmem>>, vector<64x128xf32>
      %c0_9 = arith.constant 0 : index
      %c0_10 = arith.constant 0 : index
      %13 = vector.load %arg4[%c0_9, %c0_10] : memref<1x128xf32, #tpu.memory_space<vmem>>, vector<1x128xf32>
      %14 = vector.broadcast %13 : vector<1x128xf32> to vector<64x128xf32>
      %15 = arith.addf %12, %14 : vector<64x128xf32>
      %cst_11 = arith.constant 0.000000e+00 : f32
      %16 = vector.broadcast %cst_11 : f32 to vector<64x128xf32>
      %17 = arith.maximumf %15, %16 : vector<64x128xf32>
      %18 = arith.truncf %17 : vector<64x128xf32> to vector<64x128xbf16>
      %c0_12 = arith.constant 0 : index
      %c0_13 = arith.constant 0 : index
      %19 = vector.load %arg5[%c0_12, %c0_13] : memref<64x128xbf16, #tpu.memory_space<vmem>>, vector<64x128xbf16>
      tpu.vector_store %arg5[%c0_12, %c0_13], %18 {strides = array<i32>} : memref<64x128xbf16, #tpu.memory_space<vmem>>, vector<64x128xbf16>,
    } else {
    }
    return
  }
  func.func @transform_0(%arg0: i32, %arg1: i32) -> (i32, i32) {
    %c2_i32 = arith.constant 2 : i32
    %0 = arith.muli %arg1, %c2_i32 : i32
    %1 = arith.addi %0, %arg0 : i32
    %c0_i32 = arith.constant 0 : i32
    %c0_i32_0 = arith.constant 0 : i32
    return %1, %c0_i32 : i32, i32
  }
  func.func @transform_1(%arg0: i32, %arg1: i32) -> (i32, i32) {
    %c0_i32 = arith.constant 0 : i32
    %c0_i32_0 = arith.constant 0 : i32
    %c0_i32_1 = arith.constant 0 : i32
    return %c0_i32, %c0_i32_0 : i32, i32
  }
  func.func @transform_2(%arg0: i32, %arg1: i32) -> (i32, i32) {
    %c0_i32 = arith.constant 0 : i32
    %c0_i32_0 = arith.constant 0 : i32
    %c0_i32_1 = arith.constant 0 : i32
    return %c0_i32, %c0_i32_0 : i32, i32
  }
  func.func @transform_3(%arg0: i32, %arg1: i32) -> (i32, i32) {
    %c0_i32 = arith.constant 0 : i32
    %c0_i32_0 = arith.constant 0 : i32
    return %arg0, %c0_i32 : i32, i32
  }
}

module attributes {stable_mosaic.version = 11 : i64} {
  func.func @_conv_pool_kernel(%arg0: i32, %arg1: i32, %arg2: memref<16x576xbf16, #tpu.memory_space<vmem>>, %arg3: memref<576x128xbf16, #tpu.memory_space<vmem>>, %arg4: memref<1x128xf32, #tpu.memory_space<vmem>>, %arg5: memref<16x128xbf16, #tpu.memory_space<vmem>>, %arg6: memref<16x128xf32, #tpu.memory_space<vmem>>) attributes {dimension_semantics = [#tpu.dimension_semantics<parallel>, #tpu.dimension_semantics<arbitrary>], iteration_bounds = array<i64: 1, 4>, scalar_prefetch = 0 : i64, scratch_operands = 1 : i64, tpu.core_type = #tpu.core_type<tc>, window_params = [{transform_indices = @transform_0, window_bounds = array<i64: 16, 576>}, {pipeline_mode = #tpu.pipeline_mode<synchronous>, transform_indices = @transform_1, window_bounds = array<i64: 576, 128>}, {pipeline_mode = #tpu.pipeline_mode<synchronous>, transform_indices = @transform_2, window_bounds = array<i64: 1, 128>}, {transform_indices = @transform_3, window_bounds = array<i64: 16, 128>}]} {
    %c0 = arith.constant 0 : index
    %c0_0 = arith.constant 0 : index
    %0 = vector.load %arg2[%c0, %c0_0] : memref<16x576xbf16, #tpu.memory_space<vmem>>, vector<16x576xbf16>
    %c0_1 = arith.constant 0 : index
    %c0_2 = arith.constant 0 : index
    %1 = vector.load %arg3[%c0_1, %c0_2] : memref<576x128xbf16, #tpu.memory_space<vmem>>, vector<576x128xbf16>
    %cst = arith.constant dense<0.000000e+00> : vector<16x128xf32>
    %2 = tpu.matmul %0, %1, %cst {dimension_numbers = #tpu.dot_dimension_numbers<[1], [0], [0], [1], [0, 0, 1, 1], [], []>} : vector<16x576xbf16>, vector<576x128xbf16>, vector<16x128xf32> -> vector<16x128xf32>
    %c0_i32 = arith.constant 0 : i32
    %3 = arith.cmpi eq, %arg1, %c0_i32 : i32
    %4 = arith.extui %3 : i1 to i32
    %c0_i32_3 = arith.constant 0 : i32
    %5 = arith.cmpi ne, %4, %c0_i32_3 : i32
    scf.if %5 {
      %c0_7 = arith.constant 0 : index
      %c0_8 = arith.constant 0 : index
      %12 = vector.load %arg6[%c0_7, %c0_8] : memref<16x128xf32, #tpu.memory_space<vmem>>, vector<16x128xf32>
      tpu.vector_store %arg6[%c0_7, %c0_8], %2 {strides = array<i32>} : memref<16x128xf32, #tpu.memory_space<vmem>>, vector<16x128xf32>,
    } else {
    }
    %c0_i32_4 = arith.constant 0 : i32
    %6 = arith.cmpi ne, %arg1, %c0_i32_4 : i32
    %7 = arith.extui %6 : i1 to i32
    %c0_i32_5 = arith.constant 0 : i32
    %8 = arith.cmpi ne, %7, %c0_i32_5 : i32
    scf.if %8 {
      %c0_7 = arith.constant 0 : index
      %c0_8 = arith.constant 0 : index
      %12 = vector.load %arg6[%c0_7, %c0_8] : memref<16x128xf32, #tpu.memory_space<vmem>>, vector<16x128xf32>
      %13 = arith.maximumf %12, %2 : vector<16x128xf32>
      %c0_9 = arith.constant 0 : index
      %c0_10 = arith.constant 0 : index
      %14 = vector.load %arg6[%c0_9, %c0_10] : memref<16x128xf32, #tpu.memory_space<vmem>>, vector<16x128xf32>
      tpu.vector_store %arg6[%c0_9, %c0_10], %13 {strides = array<i32>} : memref<16x128xf32, #tpu.memory_space<vmem>>, vector<16x128xf32>,
    } else {
    }
    %c3_i32 = arith.constant 3 : i32
    %9 = arith.cmpi eq, %arg1, %c3_i32 : i32
    %10 = arith.extui %9 : i1 to i32
    %c0_i32_6 = arith.constant 0 : i32
    %11 = arith.cmpi ne, %10, %c0_i32_6 : i32
    scf.if %11 {
      %c0_7 = arith.constant 0 : index
      %c0_8 = arith.constant 0 : index
      %12 = vector.load %arg6[%c0_7, %c0_8] : memref<16x128xf32, #tpu.memory_space<vmem>>, vector<16x128xf32>
      %c0_9 = arith.constant 0 : index
      %c0_10 = arith.constant 0 : index
      %13 = vector.load %arg4[%c0_9, %c0_10] : memref<1x128xf32, #tpu.memory_space<vmem>>, vector<1x128xf32>
      %14 = vector.broadcast %13 : vector<1x128xf32> to vector<16x128xf32>
      %15 = arith.addf %12, %14 : vector<16x128xf32>
      %cst_11 = arith.constant 0.000000e+00 : f32
      %16 = vector.broadcast %cst_11 : f32 to vector<16x128xf32>
      %17 = arith.maximumf %15, %16 : vector<16x128xf32>
      %18 = arith.truncf %17 : vector<16x128xf32> to vector<16x128xbf16>
      %c0_12 = arith.constant 0 : index
      %c0_13 = arith.constant 0 : index
      %19 = vector.load %arg5[%c0_12, %c0_13] : memref<16x128xbf16, #tpu.memory_space<vmem>>, vector<16x128xbf16>
      tpu.vector_store %arg5[%c0_12, %c0_13], %18 {strides = array<i32>} : memref<16x128xbf16, #tpu.memory_space<vmem>>, vector<16x128xbf16>,
    } else {
    }
    return
  }
  func.func @transform_0(%arg0: i32, %arg1: i32) -> (i32, i32) {
    %c1_i32 = arith.constant 1 : i32
    %0 = arith.muli %arg1, %c1_i32 : i32
    %1 = arith.addi %0, %arg0 : i32
    %c0_i32 = arith.constant 0 : i32
    %c0_i32_0 = arith.constant 0 : i32
    return %1, %c0_i32 : i32, i32
  }
  func.func @transform_1(%arg0: i32, %arg1: i32) -> (i32, i32) {
    %c0_i32 = arith.constant 0 : i32
    %c0_i32_0 = arith.constant 0 : i32
    %c0_i32_1 = arith.constant 0 : i32
    return %c0_i32, %c0_i32_0 : i32, i32
  }
  func.func @transform_2(%arg0: i32, %arg1: i32) -> (i32, i32) {
    %c0_i32 = arith.constant 0 : i32
    %c0_i32_0 = arith.constant 0 : i32
    %c0_i32_1 = arith.constant 0 : i32
    return %c0_i32, %c0_i32_0 : i32, i32
  }
  func.func @transform_3(%arg0: i32, %arg1: i32) -> (i32, i32) {
    %c0_i32 = arith.constant 0 : i32
    %c0_i32_0 = arith.constant 0 : i32
    return %arg0, %c0_i32 : i32, i32
  }
}

module attributes {stable_mosaic.version = 11 : i64} {
  func.func @_conv_pool_proj_kernel(%arg0: i32, %arg1: i32, %arg2: memref<16x576xbf16, #tpu.memory_space<vmem>>, %arg3: memref<576x128xbf16, #tpu.memory_space<vmem>>, %arg4: memref<1x128xf32, #tpu.memory_space<vmem>>, %arg5: memref<128x128xbf16, #tpu.memory_space<vmem>>, %arg6: memref<1x128xf32, #tpu.memory_space<vmem>>, %arg7: memref<16x128xf32, #tpu.memory_space<vmem>>, %arg8: memref<16x128xf32, #tpu.memory_space<vmem>>) attributes {dimension_semantics = [#tpu.dimension_semantics<parallel>, #tpu.dimension_semantics<arbitrary>], iteration_bounds = array<i64: 1, 4>, scalar_prefetch = 0 : i64, scratch_operands = 1 : i64, tpu.core_type = #tpu.core_type<tc>, window_params = [{transform_indices = @transform_0, window_bounds = array<i64: 16, 576>}, {pipeline_mode = #tpu.pipeline_mode<synchronous>, transform_indices = @transform_1, window_bounds = array<i64: 576, 128>}, {pipeline_mode = #tpu.pipeline_mode<synchronous>, transform_indices = @transform_2, window_bounds = array<i64: 1, 128>}, {pipeline_mode = #tpu.pipeline_mode<synchronous>, transform_indices = @transform_3, window_bounds = array<i64: 128, 128>}, {pipeline_mode = #tpu.pipeline_mode<synchronous>, transform_indices = @transform_4, window_bounds = array<i64: 1, 128>}, {transform_indices = @transform_5, window_bounds = array<i64: 16, 128>}]} {
    %c0 = arith.constant 0 : index
    %c0_0 = arith.constant 0 : index
    %0 = vector.load %arg2[%c0, %c0_0] : memref<16x576xbf16, #tpu.memory_space<vmem>>, vector<16x576xbf16>
    %c0_1 = arith.constant 0 : index
    %c0_2 = arith.constant 0 : index
    %1 = vector.load %arg3[%c0_1, %c0_2] : memref<576x128xbf16, #tpu.memory_space<vmem>>, vector<576x128xbf16>
    %cst = arith.constant dense<0.000000e+00> : vector<16x128xf32>
    %2 = tpu.matmul %0, %1, %cst {dimension_numbers = #tpu.dot_dimension_numbers<[1], [0], [0], [1], [0, 0, 1, 1], [], []>} : vector<16x576xbf16>, vector<576x128xbf16>, vector<16x128xf32> -> vector<16x128xf32>
    %c0_i32 = arith.constant 0 : i32
    %3 = arith.cmpi eq, %arg1, %c0_i32 : i32
    %4 = arith.extui %3 : i1 to i32
    %c0_i32_3 = arith.constant 0 : i32
    %5 = arith.cmpi ne, %4, %c0_i32_3 : i32
    scf.if %5 {
      %c0_7 = arith.constant 0 : index
      %c0_8 = arith.constant 0 : index
      %12 = vector.load %arg8[%c0_7, %c0_8] : memref<16x128xf32, #tpu.memory_space<vmem>>, vector<16x128xf32>
      tpu.vector_store %arg8[%c0_7, %c0_8], %2 {strides = array<i32>} : memref<16x128xf32, #tpu.memory_space<vmem>>, vector<16x128xf32>,
    } else {
    }
    %c0_i32_4 = arith.constant 0 : i32
    %6 = arith.cmpi ne, %arg1, %c0_i32_4 : i32
    %7 = arith.extui %6 : i1 to i32
    %c0_i32_5 = arith.constant 0 : i32
    %8 = arith.cmpi ne, %7, %c0_i32_5 : i32
    scf.if %8 {
      %c0_7 = arith.constant 0 : index
      %c0_8 = arith.constant 0 : index
      %12 = vector.load %arg8[%c0_7, %c0_8] : memref<16x128xf32, #tpu.memory_space<vmem>>, vector<16x128xf32>
      %13 = arith.maximumf %12, %2 : vector<16x128xf32>
      %c0_9 = arith.constant 0 : index
      %c0_10 = arith.constant 0 : index
      %14 = vector.load %arg8[%c0_9, %c0_10] : memref<16x128xf32, #tpu.memory_space<vmem>>, vector<16x128xf32>
      tpu.vector_store %arg8[%c0_9, %c0_10], %13 {strides = array<i32>} : memref<16x128xf32, #tpu.memory_space<vmem>>, vector<16x128xf32>,
    } else {
    }
    %c3_i32 = arith.constant 3 : i32
    %9 = arith.cmpi eq, %arg1, %c3_i32 : i32
    %10 = arith.extui %9 : i1 to i32
    %c0_i32_6 = arith.constant 0 : i32
    %11 = arith.cmpi ne, %10, %c0_i32_6 : i32
    scf.if %11 {
      %c0_7 = arith.constant 0 : index
      %c0_8 = arith.constant 0 : index
      %12 = vector.load %arg8[%c0_7, %c0_8] : memref<16x128xf32, #tpu.memory_space<vmem>>, vector<16x128xf32>
      %c0_9 = arith.constant 0 : index
      %c0_10 = arith.constant 0 : index
      %13 = vector.load %arg4[%c0_9, %c0_10] : memref<1x128xf32, #tpu.memory_space<vmem>>, vector<1x128xf32>
      %14 = vector.broadcast %13 : vector<1x128xf32> to vector<16x128xf32>
      %15 = arith.addf %12, %14 : vector<16x128xf32>
      %cst_11 = arith.constant 0.000000e+00 : f32
      %16 = vector.broadcast %cst_11 : f32 to vector<16x128xf32>
      %17 = arith.maximumf %15, %16 : vector<16x128xf32>
      %18 = arith.truncf %17 : vector<16x128xf32> to vector<16x128xbf16>
      %c0_12 = arith.constant 0 : index
      %c0_13 = arith.constant 0 : index
      %19 = vector.load %arg5[%c0_12, %c0_13] : memref<128x128xbf16, #tpu.memory_space<vmem>>, vector<128x128xbf16>
      %cst_14 = arith.constant dense<0.000000e+00> : vector<16x128xf32>
      %20 = tpu.matmul %18, %19, %cst_14 {dimension_numbers = #tpu.dot_dimension_numbers<[1], [0], [0], [1], [0, 0, 1, 1], [], []>} : vector<16x128xbf16>, vector<128x128xbf16>, vector<16x128xf32> -> vector<16x128xf32>
      %c0_15 = arith.constant 0 : index
      %c0_16 = arith.constant 0 : index
      %21 = vector.load %arg6[%c0_15, %c0_16] : memref<1x128xf32, #tpu.memory_space<vmem>>, vector<1x128xf32>
      %22 = vector.broadcast %21 : vector<1x128xf32> to vector<16x128xf32>
      %23 = arith.addf %20, %22 : vector<16x128xf32>
      %cst_17 = arith.constant 0.000000e+00 : f32
      %24 = vector.broadcast %cst_17 : f32 to vector<16x128xf32>
      %25 = arith.maximumf %23, %24 : vector<16x128xf32>
      %c0_18 = arith.constant 0 : index
      %c0_19 = arith.constant 0 : index
      %26 = vector.load %arg7[%c0_18, %c0_19] : memref<16x128xf32, #tpu.memory_space<vmem>>, vector<16x128xf32>
      tpu.vector_store %arg7[%c0_18, %c0_19], %25 {strides = array<i32>} : memref<16x128xf32, #tpu.memory_space<vmem>>, vector<16x128xf32>,
    } else {
    }
    return
  }
  func.func @transform_0(%arg0: i32, %arg1: i32) -> (i32, i32) {
    %c1_i32 = arith.constant 1 : i32
    %0 = arith.muli %arg1, %c1_i32 : i32
    %1 = arith.addi %0, %arg0 : i32
    %c0_i32 = arith.constant 0 : i32
    %c0_i32_0 = arith.constant 0 : i32
    return %1, %c0_i32 : i32, i32
  }
  func.func @transform_1(%arg0: i32, %arg1: i32) -> (i32, i32) {
    %c0_i32 = arith.constant 0 : i32
    %c0_i32_0 = arith.constant 0 : i32
    %c0_i32_1 = arith.constant 0 : i32
    return %c0_i32, %c0_i32_0 : i32, i32
  }
  func.func @transform_2(%arg0: i32, %arg1: i32) -> (i32, i32) {
    %c0_i32 = arith.constant 0 : i32
    %c0_i32_0 = arith.constant 0 : i32
    %c0_i32_1 = arith.constant 0 : i32
    return %c0_i32, %c0_i32_0 : i32, i32
  }
  func.func @transform_3(%arg0: i32, %arg1: i32) -> (i32, i32) {
    %c0_i32 = arith.constant 0 : i32
    %c0_i32_0 = arith.constant 0 : i32
    %c0_i32_1 = arith.constant 0 : i32
    return %c0_i32, %c0_i32_0 : i32, i32
  }
  func.func @transform_4(%arg0: i32, %arg1: i32) -> (i32, i32) {
    %c0_i32 = arith.constant 0 : i32
    %c0_i32_0 = arith.constant 0 : i32
    %c0_i32_1 = arith.constant 0 : i32
    return %c0_i32, %c0_i32_0 : i32, i32
  }
  func.func @transform_5(%arg0: i32, %arg1: i32) -> (i32, i32) {
    %c0_i32 = arith.constant 0 : i32
    %c0_i32_0 = arith.constant 0 : i32
    return %arg0, %c0_i32 : i32, i32
  }
}

</mosaic_0001>

<bundles_post_ra>
// kernel: cnn_encoder_forward.4
= control target key start
LH: loop header
LB: loop body
LE: loop exit
PB: predicated region body
PF: predicated region fallthrough
CT: control target
= control target key end

     0   :  { %v253_v0 = vmov 0.0   ;;  %s461_s1 = inlined_call_operand.vmem [shape: f32[1,128], index: 1, kind: output, shape index: {0}]   ;;  %s462_s2 = inlined_call_operand.vmem [shape: f32[1,128], index: 2, kind: output, shape index: {1}]   ;;  %s463_s0 = inlined_call_operand.vmem [shape: s32[48,128], index: 0, kind: input, shape index: {}]  }
   0x1   :  { %14 = vst [vmem:[%s461_s1] sm:$0x1] %v253_v0  ;;  %15 = vst [vmem:[%s462_s2] sm:$0x1] %v253_v0  ;;  %v278_v1 = vld [vmem:[%s463_s0] sm:$0xff]  ;;  %v283_v2 = vld [vmem:[%s463_s0 + $0x8] sm:$0xff] }
   0x2   :  { %v288_v3 = vld [vmem:[%s463_s0 + $0x10] sm:$0xff]  ;;  %v293_v4 = vld [vmem:[%s463_s0 + $0x18] sm:$0xff]  ;;  %v298_v5 = vld [vmem:[%s463_s0 + $0x20] sm:$0xff]  ;;  %v22_v7 = vand.u32 255, %v278_v1  ;;  %v23_v8 = vand.u32 255, %v283_v2  ;;  %v62_v13 = vshra.s32 %v278_v1, 8 }
   0x3   :  { %v303_v6 = vld [vmem:[%s463_s0 + $0x28] sm:$0xff]  ;;  %v24_v9 = vand.u32 255, %v288_v3  ;;  %v25_v10 = vand.u32 255, %v293_v4  ;;  %v26_v11 = vand.u32 255, %v298_v5  ;;  %v63_v17 = vshra.s32 %v283_v2, 8 }
   0x4   :  { %v27_v12 = vand.u32 255, %v303_v6  ;;  %v312_v14 = vadd.s32 4294967168, %v22_v7  ;;  %v314_v15 = vadd.s32 4294967168, %v23_v8  ;;  %v64_v21 = vshra.s32 %v288_v3, 8 }
   0x5   :  { %v316_v16 = vadd.s32 4294967168, %v24_v9  ;;  %v319_v18 = vadd.s32 4294967168, %v25_v10  ;;  %v321_v19 = vadd.s32 4294967168, %v26_v11  ;;  %v65_v22 = vshra.s32 %v293_v4, 8 }
   0x6   :  { %v323_v20 = vadd.s32 4294967168, %v27_v12  ;;  %v66_v23 = vshra.s32 %v298_v5, 8  ;;  %v67_v24 = vshra.s32 %v303_v6, 8  ;;  %v68_v25 = vand.u32 255, %v62_v13 }
   0x7   :  { %v34_v26 = vadd.s32 %v321_v19, %v312_v14  ;;  %v37_v28 = vadd.s32 %v319_v18, %v316_v16  ;;  %v69_v29 = vand.u32 255, %v63_v17  ;;  %v70_v30 = vand.u32 255, %v64_v21 }
   0x8   :  { %v35_v27 = vadd.s32 %v323_v20, %v314_v15  ;;  %v71_v31 = vand.u32 255, %v65_v22  ;;  %v72_v32 = vand.u32 255, %v66_v23  ;;  %v73_v33 = vand.u32 255, %v67_v24 }
   0x9   :  { %v335_v35 = vadd.s32 4294967168, %v68_v25  ;;  %v337_v36 = vadd.s32 4294967168, %v69_v29  ;;  %v110_v37 = vshra.s32 %v278_v1, 16  ;;  %v340_v38 = vadd.s32 4294967168, %v70_v30 }
   0xa   :  { %v36_v34 = vadd.s32 %v35_v27, %v34_v26  ;;  %v342_v39 = vadd.s32 4294967168, %v71_v31  ;;  %v344_v40 = vadd.s32 4294967168, %v72_v32  ;;  %v346_v41 = vadd.s32 4294967168, %v73_v33 }
   0xb   :  { %v111_v43 = vshra.s32 %v283_v2, 16  ;;  %v112_v44 = vshra.s32 %v288_v3, 16  ;;  %v113_v45 = vshra.s32 %v293_v4, 16  ;;  %v114_v49 = vshra.s32 %v298_v5, 16 }
   0xc   :  { %v38_v42 = vadd.s32 %v37_v28, %v36_v34  ;;  %v80_v46 = vadd.s32 %v344_v40, %v335_v35  ;;  %v81_v47 = vadd.s32 %v346_v41, %v337_v36  ;;  %v83_v48 = vadd.s32 %v342_v39, %v340_v38 }
   0xd   :  { %v115_v51 = vshra.s32 %v303_v6, 16  ;;  %v116_v52 = vand.u32 255, %v110_v37  ;;  %v117_v53 = vand.u32 255, %v111_v43  ;;  %v118_v55 = vand.u32 255, %v112_v44 }
   0xe   :  { %v39_v50 = vrot.slane %v38_v42, 4  ;;  %v82_v54 = vadd.s32 %v81_v47, %v80_v46  ;;  %v119_v56 = vand.u32 255, %v113_v45  ;;  %v120_v57 = vand.u32 255, %v114_v49 }
   0xf   :  { %v121_v59 = vand.u32 255, %v115_v51  ;;  %v359_v60 = vadd.s32 4294967168, %v116_v52  ;;  %v361_v61 = vadd.s32 4294967168, %v117_v53  ;;  %v363_v63 = vadd.s32 4294967168, %v118_v55 }
  0x10   :  { %v40_v58 = vadd.s32 %v39_v50, %v38_v42  ;;  %v84_v62 = vadd.s32 %v83_v48, %v82_v54  ;;  %v365_v0 = vadd.s32 4294967168, %v119_v56  ;;  %v367_v7 = vadd.s32 4294967168, %v120_v57 }
  0x11   :  { %v369_v9 = vadd.s32 4294967168, %v121_v59  ;;  %v240_v10 = vshrl.u32 %v278_v1, 24  ;;  %v241_v11 = vshrl.u32 %v283_v2, 24  ;;  %v242_v21 = vshrl.u32 %v288_v3, 24 }
  0x12   :  { %v41_v8 = vrot.slane %v40_v58, 2  ;;  %v85_v12 = vrot.slane %v84_v62, 4  ;;  %v128_v13 = vadd.s32 %v367_v7, %v359_v60  ;;  %v131_v17 = vadd.s32 %v365_v0, %v363_v63 }
  0x13   :  { %v129_v23 = vadd.s32 %v369_v9, %v361_v61  ;;  %v243_v24 = vshrl.u32 %v293_v4, 24  ;;  %v244_v25 = vshrl.u32 %v298_v5, 24  ;;  %v245_v2 = vshrl.u32 %v303_v6, 24 }
  0x14   :  { %v42_v22 = vadd.s32 %v41_v8, %v40_v58  ;;  %v86_v1 = vadd.s32 %v85_v12, %v84_v62  ;;  %v383_v26 = vadd.s32 4294967168, %v240_v10  ;;  %v385_v28 = vadd.s32 4294967168, %v241_v11 }
  0x15   :  { %v130_v27 = vadd.s32 %v129_v23, %v128_v13  ;;  %v387_v29 = vadd.s32 4294967168, %v242_v21  ;;  %v389_v30 = vadd.s32 4294967168, %v243_v24  ;;  %v391_v32 = vadd.s32 4294967168, %v244_v25 }
  0x16   :  { %v43_v3 = vrot.slane %v42_v22, 1  ;;  %v87_v31 = vrot.slane %v86_v1, 2  ;;  %v393_v33 = vadd.s32 4294967168, %v245_v2  ;;  %v45_v6 = vmul.u32 %v312_v14, %v312_v14 }
  0x17   :  { %v132_v4 = vadd.s32 %v131_v17, %v130_v27  ;;  %v179_v5 = vadd.s32 %v389_v30, %v387_v29  ;;  %v46_v34 = vmul.u32 %v314_v15, %v314_v15  ;;  %v176_v42 = vadd.s32 %v391_v32, %v383_v26 }
  0x18   :  { %v88_v37 = vadd.s32 %v87_v31, %v86_v1  ;;  %v177_v43 = vadd.s32 %v393_v33, %v385_v28  ;;  %v47_v44 = vmul.u32 %v316_v16, %v316_v16  ;;  %v48_v46 = vmul.u32 %v319_v18, %v319_v18 }
  0x19   :  { %v133_v45 = vrot.slane %v132_v4, 4  ;;  %v49_v14 = vmul.u32 %v321_v19, %v321_v19  ;;  %v44_v47 = vadd.s32 %v43_v3, %v42_v22  ;;  %v50_v49 = vmul.u32 %v323_v20, %v323_v20 }
  0x1a   :  { %v89_v48 = vrot.slane %v88_v37, 1  ;;  %v178_v15 = vadd.s32 %v177_v43, %v176_v42  ;;  %v54_v52 = vadd.s32 %v48_v46, %v47_v44  ;;  %v92_v53 = vmul.u32 %v335_v35, %v335_v35 }
  0x1b   :  { %v134_v50 = vadd.s32 %v133_v45, %v132_v4  ;;  %v51_v51 = vadd.s32 %v49_v14, %v45_v6  ;;  %v52_v54 = vadd.s32 %v50_v49, %v46_v34  ;;  %v93_v18 = vmul.u32 %v337_v36, %v337_v36 }
  0x1c   :  { %v180_v16 = vadd.s32 %v179_v5, %v178_v15  ;;  %v94_v19 = vmul.u32 %v340_v38, %v340_v38  ;;  %v90_v55 = vadd.s32 %v89_v48, %v88_v37  ;;  %v95_v57 = vmul.u32 %v342_v39, %v342_v39 }
  0x1d   :  { %v135_v56 = vrot.slane %v134_v50, 2  ;;  %v96_v20 = vmul.u32 %v344_v40, %v344_v40  ;;  %v53_v59 = vadd.s32 %v52_v54, %v51_v51  ;;  %v97_v35 = vmul.u32 %v346_v41, %v346_v41 }
  0x1e   :  { %v181_v58 = vrot.slane %v180_v16, 4  ;;  %v101_v10 = vadd.s32 %v95_v57, %v94_v19  ;;  %v140_v36 = vmul.u32 %v359_v60, %v359_v60  ;;  %v141_v39 = vmul.u32 %v361_v61, %v361_v61 }
  0x1f   :  { %v136_v62 = vadd.s32 %v135_v56, %v134_v50  ;;  %v98_v8 = vadd.s32 %v96_v20, %v92_v53  ;;  %v55_v11 = vadd.s32 %v54_v52, %v53_v59  ;;  %v99_v12 = vadd.s32 %v97_v35, %v93_v18 }
  0x20   :  { %v182_v38 = vadd.s32 %v181_v58, %v180_v16  ;;  %v91_v13 = vadd.s32 %v90_v55, %v44_v47  ;;  %v142_v40 = vmul.u32 %v363_v63, %v363_v63  ;;  %v143_v41 = vmul.u32 %v365_v0, %v365_v0 }
  0x21   :  { %v137_v17 = vrot.slane %v136_v62, 1  ;;  %v56_v22 = vrot.slane %v55_v11, 4  ;;  %v100_v23 = vadd.s32 %v99_v12, %v98_v8  ;;  %v144_v60 = vmul.u32 %v367_v7, %v367_v7 }
  0x22   :  { %v183_v21 = vrot.slane %v182_v38, 2  ;;  %v145_v25 = vmul.u32 %v369_v9, %v369_v9  ;;  %v149_v1 = vadd.s32 %v143_v41, %v142_v40  ;;  %v188_v61 = vmul.u32 %v383_v26, %v383_v26 }
  0x23   :  { %v138_v24 = vadd.s32 %v137_v17, %v136_v62  ;;  %v57_v27 = vadd.s32 %v56_v22, %v55_v11  ;;  %v102_v63 = vadd.s32 %v101_v10, %v100_v23  ;;  %v146_v3 = vadd.s32 %v144_v60, %v140_v36  ;;  %v210_v11 = vld [vmem:[%s462_s2] sm:$0x1] }
  0x24   :  { %v184_v2 = vadd.s32 %v183_v21, %v182_v38  ;;  %v147_v0 = vadd.s32 %v145_v25, %v141_v39  ;;  %v189_v4 = vmul.u32 %v385_v28, %v385_v28  ;;  %v190_v7 = vmul.u32 %v387_v29, %v387_v29 }
  0x25   :  { %v139_v31 = vadd.s32 %v138_v24, %v91_v13  ;;  %v58_v6 = vrot.slane %v57_v27, 2  ;;  %v103_v34 = vrot.slane %v102_v63, 4  ;;  %v191_v9 = vmul.u32 %v389_v30, %v389_v30  ;;  %v206_v30 = vld [vmem:[%s461_s1] sm:$0x1] }
  0x26   :  { %v185_v5 = vrot.slane %v184_v2, 1  ;;  %v148_v37 = vadd.s32 %v147_v0, %v146_v3  ;;  %v192_v26 = vmul.u32 %v391_v32, %v391_v32  ;;  %v193_v42 = vmul.u32 %v393_v33, %v393_v33 }
  0x27   :  { %v59_v44 = vadd.s32 %v58_v6, %v57_v27  ;;  %v104_v45 = vadd.s32 %v103_v34, %v102_v63  ;;  %v197_v29 = vadd.s32 %v191_v9, %v190_v7 }
  0x28   :  { %v186_v43 = vadd.s32 %v185_v5, %v184_v2  ;;  %v150_v28 = vadd.s32 %v149_v1, %v148_v37  ;;  %v194_v46 = vadd.s32 %v192_v26, %v188_v61  ;;  %v195_v14 = vadd.s32 %v193_v42, %v189_v4 }
  0x29   :  { %v105_v48 = vrot.slane %v104_v45, 2  ;;  %v60_v15 = vrot.slane %v59_v44, 1 }
  0x2a   :  { %v187_v47 = vadd.s32 %v186_v43, %v139_v31  ;;  %v151_v49 = vrot.slane %v150_v28, 4  ;;  %v196_v50 = vadd.s32 %v195_v14, %v194_v46 }
  0x2b   :  { %v106_v51 = vadd.s32 %v105_v48, %v104_v45  ;;  %v61_v54 = vadd.s32 %v60_v15, %v59_v44 }
  0x2c   :  { %v207_v32 = vcvt.s32.f32 %v187_v47  ;;  %v152_v52 = vadd.s32 %v151_v49, %v150_v28  ;;  %v198_v33 = vadd.s32 %v197_v29, %v196_v50 }
  0x2d   :  { %v107_v16 = vrot.slane %v106_v51, 1 }
  0x2e   :  { %v208_v53 = vadd.f32 %v207_v32, %v206_v30  ;;  %v153_v18 = vrot.slane %v152_v52, 2  ;;  %v199_v19 = vrot.slane %v198_v33, 4 }
  0x2f   :  { %v108_v55 = vadd.s32 %v107_v16, %v106_v51 }
  0x30   :  { %209 = vst [vmem:[%s461_s1] sm:$0x1] %v208_v53  ;;  %v154_v56 = vadd.s32 %v153_v18, %v152_v52  ;;  %v200_v57 = vadd.s32 %v199_v19, %v198_v33 }
  0x31   :  { %v109_v20 = vadd.s32 %v108_v55, %v61_v54 }
  0x32   :  { %v155_v58 = vrot.slane %v154_v56, 1  ;;  %v201_v59 = vrot.slane %v200_v57, 2 }
  0x34   :  { %v156_v35 = vadd.s32 %v155_v58, %v154_v56  ;;  %v202_v62 = vadd.s32 %v201_v59, %v200_v57 }
  0x36   :  { %v157_v8 = vadd.s32 %v156_v35, %v109_v20  ;;  %v203_v10 = vrot.slane %v202_v62, 1 }
  0x38   :  { %v204_v36 = vadd.s32 %v203_v10, %v202_v62 }
  0x3a   :  { %v205_v38 = vadd.s32 %v204_v36, %v157_v8 }
  0x3c   :  { %v211_v12 = vcvt.s32.f32 %v205_v38 }
  0x3e   :  { %v212_v39 = vadd.f32 %v211_v12, %v210_v11 }
  0x40   :  { %213 = vst [vmem:[%s462_s2] sm:$0x1] %v212_v39 }

// kernel: cnn_encoder_forward.5
= control target key start
LH: loop header
LB: loop body
LE: loop exit
PB: predicated region body
PF: predicated region fallthrough
CT: control target
= control target key end

     0   :  { %s781_s12 = smov 0   ;;  %s783_s13 = smov 0   ;;  %s876_s0 = inlined_call_operand.vmem [shape: bf16[512,108], index: 0, kind: input, shape index: {}]   ;;  %s877_s1 = inlined_call_operand.vmem [shape: bf16[108,128], index: 1, kind: input, shape index: {}]   ;;  %s878_s2 = inlined_call_operand.vmem [shape: f32[1,128], index: 2, kind: input, shape index: {}]   ;;  %s879_s3 = inlined_call_operand.vmem [shape: bf16[128,128], index: 3, kind: output, shape index: {}]  }
   0x1   :  { %s785_s14 = smov 0   ;;  %s787_s15 = smov 0  }
   0x2   :  { %s789_s16 = smov 0  }
   0x3 LB: > { %s22_s17 = sadd.s32 1, %s751_s14  ;;  %s25_s18 = sadd.s32 1, %s755_s15  ;;  %s759_s16 = sphi %s789_s16, %s13_s16   ;;  %s755_s15 = sphi %s787_s15, %s883_s15   ;;  %s751_s14 = sphi %s785_s14, %s882_s14   ;;  %s747_s13 = sphi %s783_s13, %s881_s13   ;;  %s743_s12 = sphi %s781_s12, %s880_s12  }
   0x4   : > { %p23_p0 = scmp.ge.s32.totalorder %s22_s17, 4  ;;  %p555_p1 = scmp.ge.s32.totalorder %s759_s16, 1 }
   0x5   : > { %p158_p2 = scmp.lt.s32.totalorder %s759_s16, 9 }
   0x6   : > { %s885_s17 = smov (%p23_p0, %s22_s17), 0  ;;  %s887_s18 = smov (!%p23_p0, %s25_s18), %s755_s15 }
   0x7   : > { %p159_p3 = pnand %p555_p1, %p158_p2  ;;  %p27_p4 = scmp.ge.s32.totalorder %s887_s18, 2 }
   0x8   : > { %s559_s19 = sshll.u32 (!%p159_p3), %s747_s13, 3  ;;  %v710_v0 = vld [vmem:[%s877_s1] sm:$0xff] (!%p159_p3)   ;;  %v711_v1 = vld [vmem:[%s877_s1 + $0x8] sm:$0xff] (!%p159_p3)   ;;  %v712_v2 = vld [vmem:[%s877_s1 + $0x10] sm:$0xff] (!%p159_p3)   ;;  %s556_s26 = sshll.u32 (!%p159_p3), %s743_s12, 1  ;;  %vm284_vm0 = vcmask (!%p159_p3), 883712  }
   0x9   : > { %s889_s18 = smov (%p27_p4, %s887_s18), 0  ;;  %162 = sbr.rel (%p159_p3) target bundleno = 281 (0x119), region = 32 }
   0xa   : > { %p195_p5 = scmp.lt.s32.totalorder (!%p159_p3), %s559_s19, 15  ;;  %632 = vmatprep.subr.bf16.mxu0 (!%p159_p3), %v710_v0  ;;  %654 = vmatprep.subr.bf16.mxu1 (!%p159_p3), %v710_v0  ;;  %s185_s28 = sadd.s32 (!%p159_p3), %s747_s13, %s556_s26  ;;  %v713_v3 = vld [vmem:[%s877_s1 + $0x18] sm:$0xff] (!%p159_p3)   ;;  %v714_v4 = vld [vmem:[%s877_s1 + $0x20] sm:$0xff] (!%p159_p3)   ;;  %v715_v7 = vld [vmem:[%s877_s1 + $0x28] sm:$0xff] (!%p159_p3)   ;;  %vm297_vm1 = vcmask (!%p159_p3), 1045504  }
   0xb   : > { %633 = vmatpush3.bf16.msra.mxu0 (!%p159_p3), %v710_v0  ;;  %661 = vmatpush3.bf16.msra.mxu1 (!%p159_p3), %v710_v0  ;;  %s557_s5 = sshll.u32 (!%p159_p3), %s185_s28, 3  ;;  %v716_v8 = vld [vmem:[%s877_s1 + $0x30] sm:$0x3f] (!%p159_p3)   ;;  %p576_p7 = scmp.ne.s32.totalorder (!%p159_p3), %s743_s12, 0 }
   0xc   : > { %634 = vmatprep.subr.bf16.mxu0 (!%p159_p3), %v711_v1  ;;  %655 = vmatprep.subr.bf16.mxu1 (!%p159_p3), %v711_v1  ;;  %p187_p6 = scmp.lt.s32.totalorder (!%p159_p3), %s557_s5, 63  ;;  %v299_v9 = vsel (!%p159_p3), %vm297_vm1, %v716_v8, 0 }
   0xf   : > { %635 = vmatpush3.bf16.msra.mxu0 (!%p159_p3), %v711_v1  ;;  %662 = vmatpush3.bf16.msra.mxu1 (!%p159_p3), %v711_v1 }
  0x10   : > { %s891_s19 = smov (!%p195_p5, %s559_s19), 15  ;;  %636 = vmatprep.subr.bf16.mxu0 %v712_v2  ;;  %656 = vmatprep.subr.bf16.mxu1 %v712_v2  ;;  %s893_s5 = smov (!%p187_p6, %s557_s5), 63 }
  0x11   : > { %s560_s27 = sshll.u32 %s891_s19, 2  ;;  %s558_s10 = sshll.u32 %s893_s5, 2 }
  0x12   : > { %s830_s4 = scalar_lea.vmem %s879_s3, %s560_s27  ;;  %s190_s19 = scalar_lea.vmem %s876_s0, %s558_s10 }
  0x13   : > { %637 = vmatpush3.bf16.msra.mxu0 %v712_v2  ;;  %663 = vmatpush3.bf16.msra.mxu1 %v712_v2  ;;  %v717_v5 = vld [vmem:[%s190_s19] sm:$0xff]   ;;  %v718_v6 = vld [vmem:[%s190_s19 + $0x10] sm:$0xff]   ;;  %v719_v10 = vld [vmem:[%s190_s19 + $0x8] sm:$0xff]  }
  0x14   : > { %638 = vmatprep.subr.bf16.mxu0 %v713_v3  ;;  %657 = vmatprep.subr.bf16.mxu1 %v713_v3  ;;  %v720_v11 = vld [vmem:[%s190_s19 + $0x18] sm:$0xff]  }
  0x15   : > { %646 = vmatprep.mubr.msk.bf16.mxu0 %vm284_vm0, %v717_v5  ;;  %650 = vmatprep.mubr.msk.bf16.mxu1 %vm284_vm0, %v718_v6 }
  0x17   : > { %639 = vmatpush3.bf16.msra.mxu0 %v713_v3  ;;  %664 = vmatpush3.bf16.msra.mxu1 %v713_v3 }
  0x18   : > { %640 = vmatprep.subr.bf16.mxu0 %v714_v4  ;;  %658 = vmatprep.subr.bf16.mxu1 %v714_v4 }
  0x1b   : > { %641 = vmatpush3.bf16.msra.mxu0 %v714_v4  ;;  %665 = vmatpush3.bf16.msra.mxu1 %v714_v4 }
  0x1c   : > { %642 = vmatprep.subr.bf16.mxu0 %v715_v7  ;;  %659 = vmatprep.subr.bf16.mxu1 %v715_v7 }
  0x1f   : > { %643 = vmatpush3.bf16.msra.mxu0 %v715_v7  ;;  %666 = vmatpush3.bf16.msra.mxu1 %v715_v7 }
  0x20   : > { %668 = vmatprep.subr.msk.bf16.mxu0 %vm297_vm1, %v716_v8  ;;  %669 = vmatprep.subr.msk.bf16.mxu1 %vm297_vm1, %v716_v8 }
  0x23   : > { %645 = vmatpush3.bf16.msra.mxu0 %v299_v9  ;;  %667 = vmatpush3.bf16.msra.mxu1 %v299_v9 }
  0x26   : > { %647 = vmatmul.mubr.msk.bf16.vlgmr.msra.gmra.mrb[0].mxu0 %vm284_vm0, %v719_v10  ;;  %651 = vmatmul.mubr.msk.bf16.vlgmr.msra.gmra.mrb[0].mxu1 %vm284_vm0, %v720_v11 }
  0xf6   : > { %369 = sbr.rel (%p576_p7) target bundleno = 254 (0xfe), region = 36 }
  0xf9   : > { %v648_v12 = vpop.f32.mrb[0].mxu0  ;;  %v652_v13 = vpop.f32.mrb[0].mxu1 }
  0xfa   : > { %v335_v14 = vpop.f32.mrb[1].mxu0  ;;  %v351_v15 = vpop.f32.mrb[1].mxu1  ;;  %372 = vst [vmem:[#allocation2 + $0x10] sm:$0xff] (!%p576_p7), %v648_v12  ;;  %376 = vst [vmem:[#allocation2 + $0x30] sm:$0xff] (!%p576_p7), %v652_v13 }
  0xfb   : > { %v649_v16 = vpop.f32.mrb[2].mxu0  ;;  %v653_v17 = vpop.f32.mrb[2].mxu1  ;;  %370 = vst [vmem:[#allocation2] sm:$0xff] (!%p576_p7), %v335_v14  ;;  %374 = vst [vmem:[#allocation2 + $0x20] sm:$0xff] (!%p576_p7), %v351_v15 }
  0xfc   : > { %v338_v18 = vpop.f32.mrb[3].mxu0  ;;  %v354_v19 = vpop.f32.mrb[3].mxu1  ;;  %373 = vst [vmem:[#allocation2 + $0x18] sm:$0xff] (!%p576_p7), %v649_v16  ;;  %377 = vst [vmem:[#allocation2 + $0x38] sm:$0xff] (!%p576_p7), %v653_v17 }
  0xfd   : > { %371 = vst [vmem:[#allocation2 + $0x8] sm:$0xff] %v338_v18  ;;  %375 = vst [vmem:[#allocation2 + $0x28] sm:$0xff] %v354_v19 }
  0xfe PF: > { %p577_p8 = scmp.eq.s32.totalorder %s743_s12, 0 }
 0x100   : > { %381 = sbr.rel (%p577_p8) target bundleno = 266 (0x10a), region = 40 }
 0x102   : > { %v384_v22 = vld [vmem:[#allocation2 + $0x10] sm:$0xff] (!%p577_p8) }
 0x103   : > { %v382_v20 = vld [vmem:[#allocation2] sm:$0xff] (!%p577_p8)  ;;  %v392_v25 = vmax.f32 (!%p577_p8), %v384_v22, %v648_v12  ;;  %v388_v32 = vld [vmem:[#allocation2 + $0x30] sm:$0xff] (!%p577_p8) }
 0x104   : > { %v383_v21 = vld [vmem:[#allocation2 + $0x8] sm:$0xff] (!%p577_p8)  ;;  %v390_v23 = vmax.f32 (!%p577_p8), %v382_v20, %v335_v14  ;;  %v385_v26 = vld [vmem:[#allocation2 + $0x18] sm:$0xff] (!%p577_p8)  ;;  %v386_v27 = vld [vmem:[#allocation2 + $0x20] sm:$0xff] (!%p577_p8)  ;;  %v396_v34 = vmax.f32 (!%p577_p8), %v388_v32, %v652_v13 }
 0x105   : > { %v391_v24 = vmax.f32 (!%p577_p8), %v383_v21, %v338_v18  ;;  %v387_v28 = vld [vmem:[#allocation2 + $0x28] sm:$0xff] (!%p577_p8)  ;;  %v393_v29 = vmax.f32 (!%p577_p8), %v385_v26, %v649_v16  ;;  %v394_v30 = vmax.f32 (!%p577_p8), %v386_v27, %v351_v15  ;;  %v389_v33 = vld [vmem:[#allocation2 + $0x38] sm:$0xff] (!%p577_p8)  ;;  %400 = vst [vmem:[#allocation2 + $0x10] sm:$0xff] (!%p577_p8), %v392_v25 }
 0x106   : > { %v395_v31 = vmax.f32 (!%p577_p8), %v387_v28, %v354_v19  ;;  %398 = vst [vmem:[#allocation2] sm:$0xff] (!%p577_p8), %v390_v23  ;;  %v397_v35 = vmax.f32 (!%p577_p8), %v389_v33, %v653_v17  ;;  %404 = vst [vmem:[#allocation2 + $0x30] sm:$0xff] (!%p577_p8), %v396_v34 }
 0x107   : > { %399 = vst [vmem:[#allocation2 + $0x8] sm:$0xff] %v391_v24  ;;  %401 = vst [vmem:[#allocation2 + $0x18] sm:$0xff] %v393_v29 }
 0x108   : > { %402 = vst [vmem:[#allocation2 + $0x20] sm:$0xff] %v394_v30  ;;  %403 = vst [vmem:[#allocation2 + $0x28] sm:$0xff] %v395_v31 }
 0x109   : > { %405 = vst [vmem:[#allocation2 + $0x38] sm:$0xff] %v397_v35 }
 0x10a PF: > { %p578_p9 = scmp.ne.s32.totalorder %s743_s12, 3 }
 0x10b   : > { %v579_v38 = vld [vmem:[%s878_s2] ss:$0 sm:$0xff] (!%p578_p9) }
 0x10c   : > { %409 = sbr.rel (%p578_p9) target bundleno = 281 (0x119), region = 44 }
 0x10f   : > { %v412_v41 = vld [vmem:[#allocation2 + $0x10] sm:$0xff] (!%p578_p9)  ;;  %v414_v43 = vld [vmem:[#allocation2 + $0x20] sm:$0xff] (!%p578_p9)  ;;  %v415_v46 = vld [vmem:[#allocation2 + $0x28] sm:$0xff] (!%p578_p9) }
 0x110   : > { %v410_v36 = vld [vmem:[#allocation2] sm:$0xff] (!%p578_p9)  ;;  %v427_v44 = vadd.f32 (!%p578_p9), %v579_v38, %v412_v41  ;;  %v429_v47 = vadd.f32 (!%p578_p9), %v579_v38, %v414_v43  ;;  %v416_v48 = vld [vmem:[#allocation2 + $0x30] sm:$0xff] (!%p578_p9)  ;;  %v417_v49 = vld [vmem:[#allocation2 + $0x38] sm:$0xff] (!%p578_p9)  ;;  %v430_v52 = vadd.f32 (!%p578_p9), %v579_v38, %v415_v46 }
 0x111   : > { %v411_v37 = vld [vmem:[#allocation2 + $0x8] sm:$0xff] (!%p578_p9)  ;;  %v425_v39 = vadd.f32 (!%p578_p9), %v579_v38, %v410_v36  ;;  %v413_v42 = vld [vmem:[#allocation2 + $0x18] sm:$0xff] (!%p578_p9)  ;;  %v431_v53 = vadd.f32 (!%p578_p9), %v579_v38, %v416_v48  ;;  %v432_v57 = vadd.f32 (!%p578_p9), %v579_v38, %v417_v49 }
 0x112   : > { %v426_v40 = vadd.f32 (!%p578_p9), %v579_v38, %v411_v37  ;;  %v428_v45 = vadd.f32 (!%p578_p9), %v579_v38, %v413_v42  ;;  %v435_v54 = vmax.f32 (!%p578_p9), %v427_v44, 0.0  ;;  %v437_v56 = vmax.f32 (!%p578_p9), %v429_v47, 0.0 }
 0x113   : > { %v433_v50 = vmax.f32 %v425_v39, 0.0  ;;  %v438_v59 = vmax.f32 %v430_v52, 0.0  ;;  %v439_v60 = vmax.f32 %v431_v53, 0.0  ;;  %v440_v62 = vmax.f32 %v432_v57, 0.0 }
 0x114   : > { %v434_v51 = vmax.f32 %v426_v40, 0.0  ;;  %v436_v55 = vmax.f32 %v428_v45, 0.0 }
 0x115   : > { %v611_v63 = vpack.c.bf16 %v438_v59, %v437_v56  ;;  %v616_v0 = vpack.c.bf16 %v440_v62, %v439_v60 }
 0x116   : > { %v601_v58 = vpack.c.bf16 %v434_v51, %v433_v50  ;;  %v606_v61 = vpack.c.bf16 %v436_v55, %v435_v54 }
 0x117   : > { %619 = vst [vmem:[%s830_s4 + $0x10] sm:$0xff] %v611_v63   ;;  %620 = vst [vmem:[%s830_s4 + $0x18] sm:$0xff] %v616_v0  }
 0x118   : > { %602 = vst [vmem:[%s830_s4] sm:$0xff] %v601_v58   ;;  %618 = vst [vmem:[%s830_s4 + $0x8] sm:$0xff] %v606_v61  }
 0x119 PF: > { %s13_s16 = sadd.s32 1, %s759_s16   ;;  %s880_s12 = smov %s751_s14 }
 0x11a   : > { %p10_p10 = scmp.ge.s32.totalorder %s13_s16, 10   ;;  %s881_s13 = smov %s755_s15 }
 0x11b   : > { %s882_s14 = smov %s885_s17  ;;  %s883_s15 = smov %s889_s18 }
 0x11c   :  { %12 = sbr.rel (!%p10_p10) target bundleno = 3 (0x3), region = 74 }

// kernel: cnn_encoder_forward.6
= control target key start
LH: loop header
LB: loop body
LE: loop exit
PB: predicated region body
PF: predicated region fallthrough
CT: control target
= control target key end

     0   :  { %s990_s12 = smov 0   ;;  %s992_s13 = smov 0   ;;  %s1140_s0 = inlined_call_operand.vmem [shape: bf16[64,576], index: 0, kind: input, shape index: {}]   ;;  %s1141_s1 = inlined_call_operand.vmem [shape: bf16[576,128], index: 1, kind: input, shape index: {}]   ;;  %s1142_s2 = inlined_call_operand.vmem [shape: f32[1,128], index: 2, kind: input, shape index: {}]   ;;  %s1143_s3 = inlined_call_operand.vmem [shape: bf16[16,128], index: 3, kind: output, shape index: {}]  }
   0x1   :  { %s994_s14 = smov 0  }
   0x2 LB: > { %s22_s15 = sadd.s32 1, %s962_s13  ;;  %p751_p0 = scmp.ge.s32.totalorder %s966_s14, 1  ;;  %s966_s14 = sphi %s994_s14, %s13_s14   ;;  %s962_s13 = sphi %s992_s13, %s1145_s13   ;;  %s958_s12 = sphi %s990_s12, %s1144_s12  }
   0x3   : > { %p23_p1 = scmp.ge.s32.totalorder %s22_s15, 4  ;;  %p155_p2 = scmp.lt.s32.totalorder %s966_s14, 5 }
   0x5   : > { %s1147_s15 = smov (%p23_p1, %s22_s15), 0  ;;  %p156_p3 = pnand %p751_p0, %p155_p2 }
   0x6   : > { %v901_v0 = vld [vmem:[%s1141_s1 + $0x40] sm:$0xff] (!%p156_p3)   ;;  %v905_v4 = vld [vmem:[%s1141_s1 + $0x48] sm:$0xff] (!%p156_p3)   ;;  %v909_v8 = vld [vmem:[%s1141_s1 + $0x50] sm:$0xff] (!%p156_p3)   ;;  %s752_s23 = sshll.u32 (!%p156_p3), %s958_s12, 1  ;;  %v968_v34 = vmov (!%p156_p3), 0.0   ;;  %vm969_vm0 = vmmov (!%p156_p3), 0  }
   0x7   : > { %159 = sbr.rel (%p156_p3) target bundleno = 297 (0x129), region = 32  ;;  %v902_v1 = vld [vmem:[%s1141_s1 + $0xc0] sm:$0xff] (!%p156_p3)   ;;  %813 = vmatprep.subr.bf16.mxu0 (!%p156_p3), %v901_v0  ;;  %v906_v5 = vld [vmem:[%s1141_s1 + $0xc8] sm:$0xff] (!%p156_p3)   ;;  %v910_v9 = vld [vmem:[%s1141_s1 + $0xd0] sm:$0xff] (!%p156_p3)   ;;  %p183_p4 = scmp.lt.s32.totalorder (!%p156_p3), %s752_s23, 7  ;;  %vm516_vm1 = vcmask (!%p156_p3), 523264  }
   0x8   : > { %v903_v2 = vld [vmem:[%s1141_s1] sm:$0xff] (!%p156_p3)   ;;  %835 = vmatprep.subr.bf16.mxu1 (!%p156_p3), %v902_v1  ;;  %v907_v6 = vld [vmem:[%s1141_s1 + $0x8] sm:$0xff] (!%p156_p3)   ;;  %v911_v10 = vld [vmem:[%s1141_s1 + $0x10] sm:$0xff] (!%p156_p3)   ;;  %p796_p5 = scmp.ne.s32.totalorder (!%p156_p3), %s958_s12, 0 }
   0x9   : > { %v904_v3 = vld [vmem:[%s1141_s1 + $0x80] sm:$0xff] (!%p156_p3)   ;;  %814 = vmatpush3.bf16.msra.mxu0 (!%p156_p3), %v903_v2  ;;  %v908_v7 = vld [vmem:[%s1141_s1 + $0x88] sm:$0xff] (!%p156_p3)   ;;  %v912_v11 = vld [vmem:[%s1141_s1 + $0x90] sm:$0xff] (!%p156_p3)  }
   0xa   : > { %836 = vmatpush3.bf16.msra.mxu1 (!%p156_p3), %v904_v3  ;;  %815 = vmatprep.subr.bf16.mxu0 (!%p156_p3), %v905_v4  ;;  %v913_v12 = vld [vmem:[%s1141_s1 + $0x58] sm:$0xff] (!%p156_p3)   ;;  %v917_v16 = vld [vmem:[%s1141_s1 + $0x60] sm:$0xff] (!%p156_p3)   ;;  %v921_v20 = vld [vmem:[%s1141_s1 + $0x68] sm:$0xff] (!%p156_p3)  }
   0xb   : > { %837 = vmatprep.subr.bf16.mxu1 (!%p156_p3), %v906_v5  ;;  %v914_v13 = vld [vmem:[%s1141_s1 + $0xd8] sm:$0xff] (!%p156_p3)   ;;  %v918_v17 = vld [vmem:[%s1141_s1 + $0xe0] sm:$0xff] (!%p156_p3)   ;;  %v922_v21 = vld [vmem:[%s1141_s1 + $0xe8] sm:$0xff] (!%p156_p3)  }
   0xc   : > { %v915_v14 = vld [vmem:[%s1141_s1 + $0x18] sm:$0xff] (!%p156_p3)   ;;  %v919_v18 = vld [vmem:[%s1141_s1 + $0x20] sm:$0xff] (!%p156_p3)   ;;  %v923_v22 = vld [vmem:[%s1141_s1 + $0x28] sm:$0xff] (!%p156_p3)  }
   0xd   : > { %816 = vmatpush3.bf16.msra.mxu0 (!%p156_p3), %v907_v6  ;;  %v916_v15 = vld [vmem:[%s1141_s1 + $0x98] sm:$0xff] (!%p156_p3)   ;;  %v920_v19 = vld [vmem:[%s1141_s1 + $0xa0] sm:$0xff] (!%p156_p3)   ;;  %v924_v23 = vld [vmem:[%s1141_s1 + $0xa8] sm:$0xff] (!%p156_p3)  }
   0xe   : > { %838 = vmatpush3.bf16.msra.mxu1 %v908_v7  ;;  %817 = vmatprep.subr.bf16.mxu0 %v909_v8  ;;  %s1149_s23 = smov (!%p183_p4, %s752_s23), 7  ;;  %v925_v24 = vld [vmem:[%s1141_s1 + $0x70] sm:$0xff]   ;;  %v929_v28 = vld [vmem:[%s1141_s1 + $0x78] sm:$0xff]   ;;  %v939_v37 = vld [vmem:[%s1141_s1 + $0x100] sm:$0xff]  }
   0xf   : > { %839 = vmatprep.subr.bf16.mxu1 %v910_v9  ;;  %v926_v25 = vld [vmem:[%s1141_s1 + $0xf0] sm:$0xff]   ;;  %s874_s24 = smul.u32 20, %s1149_s23  ;;  %v930_v29 = vld [vmem:[%s1141_s1 + $0xf8] sm:$0xff]   ;;  %v940_v38 = vld [vmem:[%s1141_s1 + $0x108] sm:$0xff]  }
  0x10   : > { %v927_v26 = vld [vmem:[%s1141_s1 + $0x30] sm:$0xff]   ;;  %v931_v30 = vld [vmem:[%s1141_s1 + $0x38] sm:$0xff]  }
  0x11   : > { %818 = vmatpush3.bf16.msra.mxu0 %v911_v10  ;;  %v928_v27 = vld [vmem:[%s1141_s1 + $0xb0] sm:$0xff]   ;;  %s187_s7 = scalar_lea.vmem %s1140_s0, %s874_s24  ;;  %v932_v31 = vld [vmem:[%s1141_s1 + $0xb8] sm:$0xff]  }
  0x12   : > { %840 = vmatpush3.bf16.msra.mxu1 %v912_v11  ;;  %819 = vmatprep.subr.bf16.mxu0 %v913_v12  ;;  %v933_v32 = vld [vmem:[%s187_s7] ss:$20 sps:$4 sm:$0xff]   ;;  %v935_v33 = vld [vmem:[%s187_s7 + $0x4] ss:$20 sps:$4 sm:$0xff]   ;;  %v936_v35 = vld [vmem:[%s187_s7 + $0x8] ss:$20 sps:$4 sm:$0xff]  }
  0x13   : > { %841 = vmatprep.subr.bf16.mxu1 %v914_v13  ;;  %v938_v36 = vld [vmem:[%s187_s7 + $0xc] ss:$20 sps:$4 sm:$0xff]   ;;  %552 = vmatprep.mubr.bf16.mxu0 %v935_v33  ;;  %v941_v39 = vld [vmem:[%s1141_s1 + $0x110] sm:$0xff]   ;;  %v942_v40 = vld [vmem:[%s1141_s1 + $0x118] sm:$0xff]  }
  0x14   : > { %593 = vmatprep.mubr.bf16.mxu1 %v938_v36  ;;  %v943_v41 = vld [vmem:[%s187_s7 + $0x10] ss:$20 sps:$4 sm:$0xff]  }
  0x15   : > { %820 = vmatpush3.bf16.msra.mxu0 %v915_v14 }
  0x16   : > { %842 = vmatpush3.bf16.msra.mxu1 %v916_v15  ;;  %821 = vmatprep.subr.bf16.mxu0 %v917_v16 }
  0x17   : > { %843 = vmatprep.subr.bf16.mxu1 %v918_v17 }
  0x19   : > { %822 = vmatpush3.bf16.msra.mxu0 %v919_v18 }
  0x1a   : > { %844 = vmatpush3.bf16.msra.mxu1 %v920_v19  ;;  %823 = vmatprep.subr.bf16.mxu0 %v921_v20 }
  0x1b   : > { %845 = vmatprep.subr.bf16.mxu1 %v922_v21 }
  0x1d   : > { %824 = vmatpush3.bf16.msra.mxu0 %v923_v22 }
  0x1e   : > { %846 = vmatpush3.bf16.msra.mxu1 %v924_v23  ;;  %825 = vmatprep.subr.bf16.mxu0 %v925_v24 }
  0x1f   : > { %847 = vmatprep.subr.bf16.mxu1 %v926_v25 }
  0x21   : > { %826 = vmatpush3.bf16.msra.mxu0 %v927_v26 }
  0x22   : > { %848 = vmatpush3.bf16.msra.mxu1 %v928_v27  ;;  %827 = vmatprep.subr.bf16.mxu0 %v929_v28 }
  0x23   : > { %849 = vmatprep.subr.bf16.mxu1 %v930_v29 }
  0x25   : > { %828 = vmatpush3.bf16.msra.mxu0 %v931_v30 }
  0x26   : > { %850 = vmatpush3.bf16.msra.mxu1 %v932_v31  ;;  %862 = vmatprep.subr.bf16.mxu0 %v968_v34 }
  0x28   : > { %553 = vmatmul.mubr.bf16.vlgmr.msra.gmra.mrb[0].mxu0 %v933_v32 }
  0x29   : > { %594 = vmatmul.mubr.bf16.vlgmr.msra.gmra.mrb[0].mxu1 %v936_v35  ;;  %863 = vmatpush3.bf16.msra.mxu0 %v939_v37 }
  0x2a   : > { %864 = vmatprep.subr.bf16.mxu0 %v968_v34  ;;  %870 = vmatprep.mubr.msk.bf16.mxu0 %vm969_vm0, %v968_v34 }
  0x2d   : > { %865 = vmatpush3.bf16.msra.mxu0 %v940_v38 }
  0x2e   : > { %866 = vmatprep.subr.bf16.mxu0 %v968_v34 }
  0x31   : > { %867 = vmatpush3.bf16.msra.mxu0 %v941_v39 }
  0x32   : > { %868 = vmatprep.subr.bf16.mxu0 %v968_v34 }
  0x35   : > { %869 = vmatpush3.bf16.msra.mxu0 %v942_v40 }
  0x38   : > { %871 = vmatmul.mubr.msk.bf16.vlgmr.msra.gmra.mrb[4].mxu0 %vm516_vm1, %v943_v41 }
  0xfb   : > { %v829_v42 = vpop.f32.mrb[0].mxu0 }
  0xfc   : > { %v851_v43 = vpop.f32.mrb[0].mxu1  ;;  %v830_v44 = vpop.f32.mrb[1].mxu0 }
  0xfd   : > { %v831_v45 = vadd.f32 %v830_v44, %v829_v42  ;;  %v852_v46 = vpop.f32.mrb[1].mxu1  ;;  %v832_v47 = vpop.f32.mrb[2].mxu0 }
  0xfe   : > { %v853_v48 = vadd.f32 %v852_v46, %v851_v43  ;;  %v854_v49 = vpop.f32.mrb[2].mxu1  ;;  %v833_v50 = vpop.f32.mrb[3].mxu0 }
  0xff   : > { %v834_v51 = vadd.f32 %v833_v50, %v832_v47  ;;  %v855_v52 = vpop.f32.mrb[3].mxu1 }
 0x100   : > { %v856_v53 = vadd.f32 %v855_v52, %v854_v49  ;;  %v596_v54 = vadd.f32 %v853_v48, %v831_v45 }
 0x102   : > { %v599_v55 = vadd.f32 %v856_v53, %v834_v51 }
 0x108   : > { %646 = sbr.rel (%p796_p5) target bundleno = 273 (0x111), region = 36 }
 0x10b   : > { %v636_v56 = vpop.f32.mrb[4].mxu0 }
 0x10c   : > { %v637_v57 = vadd.f32 %v636_v56, %v596_v54  ;;  %v872_v58 = vpop.f32.mrb[5].mxu0 }
 0x10d   : > { %v639_v59 = vpop.f32.mrb[6].mxu0 }
 0x10e   : > { %v640_v60 = vadd.f32 %v639_v59, %v599_v55  ;;  %v873_v61 = vpop.f32.mrb[7].mxu0  ;;  %647 = vst [vmem:[#allocation2] sm:$0xff] (!%p796_p5), %v637_v57 }
 0x110   : > { %648 = vst [vmem:[#allocation2 + $0x8] sm:$0xff] %v640_v60 }
 0x111 PF: > { %p797_p6 = scmp.eq.s32.totalorder %s958_s12, 0 }
 0x113   : > { %652 = sbr.rel (%p797_p6) target bundleno = 283 (0x11b), region = 40 }
 0x117   : > { %v653_v62 = vld [vmem:[#allocation2] sm:$0xff] (!%p797_p6)  ;;  %v654_v63 = vld [vmem:[#allocation2 + $0x8] sm:$0xff] (!%p797_p6) }
 0x118   : > { %v655_v0 = vmax.f32 (!%p797_p6), %v653_v62, %v637_v57  ;;  %v656_v1 = vmax.f32 (!%p797_p6), %v654_v63, %v640_v60 }
 0x11a   : > { %657 = vst [vmem:[#allocation2] sm:$0xff] %v655_v0  ;;  %658 = vst [vmem:[#allocation2 + $0x8] sm:$0xff] %v656_v1 }
 0x11b PF: > { %p798_p7 = scmp.ne.s32.totalorder %s958_s12, 3 }
 0x11c   : > { %v799_v4 = vld [vmem:[%s1142_s2] ss:$0 sm:$0xff] (!%p798_p7) }
 0x11d   : > { %662 = sbr.rel (%p798_p7) target bundleno = 297 (0x129), region = 44 }
 0x121   : > { %v663_v2 = vld [vmem:[#allocation2] sm:$0xff] (!%p798_p7)  ;;  %v664_v3 = vld [vmem:[#allocation2 + $0x8] sm:$0xff] (!%p798_p7) }
 0x122   : > { %v672_v5 = vadd.f32 (!%p798_p7), %v799_v4, %v663_v2  ;;  %v673_v6 = vadd.f32 (!%p798_p7), %v799_v4, %v664_v3 }
 0x124   : > { %v674_v7 = vmax.f32 %v672_v5, 0.0  ;;  %v675_v8 = vmax.f32 %v673_v6, 0.0 }
 0x126   : > { %v811_v9 = vpack.c.bf16 %v675_v8, %v674_v7 }
 0x128   : > { %812 = vst [vmem:[%s1143_s3] sm:$0xff] %v811_v9  }
 0x129 PF: > { %s13_s14 = sadd.s32 1, %s966_s14   ;;  %s1144_s12 = smov %s962_s13 }
 0x12a   : > { %p10_p8 = scmp.ge.s32.totalorder %s13_s14, 6   ;;  %s1145_s13 = smov %s1147_s15 }
 0x12c   :  { %12 = sbr.rel (!%p10_p8) target bundleno = 2 (0x2), region = 74 }

// kernel: cnn_encoder_forward.7
= control target key start
LH: loop header
LB: loop body
LE: loop exit
PB: predicated region body
PF: predicated region fallthrough
CT: control target
= control target key end

     0   :  { %s1202_s18 = smov 0   ;;  %s1204_s19 = smov 0   ;;  %s1382_s0 = inlined_call_operand.vmem [shape: bf16[64,576], index: 0, kind: input, shape index: {}]   ;;  %s1383_s1 = inlined_call_operand.vmem [shape: bf16[576,128], index: 1, kind: input, shape index: {}]   ;;  %s1384_s2 = inlined_call_operand.vmem [shape: f32[1,128], index: 2, kind: input, shape index: {}]   ;;  %s1385_s3 = inlined_call_operand.vmem [shape: bf16[128,128], index: 3, kind: input, shape index: {}]   ;;  %s1386_s4 = inlined_call_operand.vmem [shape: f32[1,128], index: 4, kind: input, shape index: {}]   ;;  %s1387_s5 = inlined_call_operand.vmem [shape: f32[16,128], index: 5, kind: output, shape index: {}]  }
   0x1   :  { %s1206_s20 = smov 0  }
   0x2 LB: > { %s24_s21 = sadd.s32 1, %s1162_s19  ;;  %p912_p0 = scmp.ge.s32.totalorder %s1166_s20, 1  ;;  %s1166_s20 = sphi %s1206_s20, %s15_s20   ;;  %s1162_s19 = sphi %s1204_s19, %s1389_s19   ;;  %s1158_s18 = sphi %s1202_s18, %s1388_s18  }
   0x3   : > { %p25_p1 = scmp.ge.s32.totalorder %s24_s21, 4  ;;  %p205_p2 = scmp.lt.s32.totalorder %s1166_s20, 5 }
   0x5   : > { %s1391_s21 = smov (%p25_p1, %s24_s21), 0  ;;  %p206_p3 = pnand %p912_p0, %p205_p2 }
   0x6   : > { %v1093_v0 = vld [vmem:[%s1383_s1 + $0x40] sm:$0xff] (!%p206_p3)   ;;  %v1097_v4 = vld [vmem:[%s1383_s1 + $0x48] sm:$0xff] (!%p206_p3)   ;;  %v1101_v8 = vld [vmem:[%s1383_s1 + $0x50] sm:$0xff] (!%p206_p3)   ;;  %s913_s6 = sshll.u32 (!%p206_p3), %s1158_s18, 1  ;;  %v1168_v34 = vmov (!%p206_p3), 0.0   ;;  %vm1169_vm0 = vmmov (!%p206_p3), 0  }
   0x7   : > { %209 = sbr.rel (%p206_p3) target bundleno = 536 (0x218), region = 40  ;;  %v1094_v1 = vld [vmem:[%s1383_s1 + $0xc0] sm:$0xff] (!%p206_p3)   ;;  %974 = vmatprep.subr.bf16.mxu0 (!%p206_p3), %v1093_v0  ;;  %v1098_v5 = vld [vmem:[%s1383_s1 + $0xc8] sm:$0xff] (!%p206_p3)   ;;  %v1102_v9 = vld [vmem:[%s1383_s1 + $0xd0] sm:$0xff] (!%p206_p3)   ;;  %p237_p4 = scmp.lt.s32.totalorder (!%p206_p3), %s913_s6, 7  ;;  %vm570_vm1 = vcmask (!%p206_p3), 523264  }
   0x8   : > { %v1095_v2 = vld [vmem:[%s1383_s1] sm:$0xff] (!%p206_p3)   ;;  %996 = vmatprep.subr.bf16.mxu1 (!%p206_p3), %v1094_v1  ;;  %v1099_v6 = vld [vmem:[%s1383_s1 + $0x8] sm:$0xff] (!%p206_p3)   ;;  %v1103_v10 = vld [vmem:[%s1383_s1 + $0x10] sm:$0xff] (!%p206_p3)   ;;  %p957_p5 = scmp.ne.s32.totalorder (!%p206_p3), %s1158_s18, 0 }
   0x9   : > { %v1096_v3 = vld [vmem:[%s1383_s1 + $0x80] sm:$0xff] (!%p206_p3)   ;;  %975 = vmatpush3.bf16.msra.mxu0 (!%p206_p3), %v1095_v2  ;;  %v1100_v7 = vld [vmem:[%s1383_s1 + $0x88] sm:$0xff] (!%p206_p3)   ;;  %v1104_v11 = vld [vmem:[%s1383_s1 + $0x90] sm:$0xff] (!%p206_p3)  }
   0xa   : > { %997 = vmatpush3.bf16.msra.mxu1 (!%p206_p3), %v1096_v3  ;;  %976 = vmatprep.subr.bf16.mxu0 (!%p206_p3), %v1097_v4  ;;  %v1105_v12 = vld [vmem:[%s1383_s1 + $0x58] sm:$0xff] (!%p206_p3)   ;;  %v1109_v16 = vld [vmem:[%s1383_s1 + $0x60] sm:$0xff] (!%p206_p3)   ;;  %v1113_v20 = vld [vmem:[%s1383_s1 + $0x68] sm:$0xff] (!%p206_p3)  }
   0xb   : > { %998 = vmatprep.subr.bf16.mxu1 (!%p206_p3), %v1098_v5  ;;  %v1106_v13 = vld [vmem:[%s1383_s1 + $0xd8] sm:$0xff] (!%p206_p3)   ;;  %v1110_v17 = vld [vmem:[%s1383_s1 + $0xe0] sm:$0xff] (!%p206_p3)   ;;  %v1114_v21 = vld [vmem:[%s1383_s1 + $0xe8] sm:$0xff] (!%p206_p3)  }
   0xc   : > { %v1107_v14 = vld [vmem:[%s1383_s1 + $0x18] sm:$0xff] (!%p206_p3)   ;;  %v1111_v18 = vld [vmem:[%s1383_s1 + $0x20] sm:$0xff] (!%p206_p3)   ;;  %v1115_v22 = vld [vmem:[%s1383_s1 + $0x28] sm:$0xff] (!%p206_p3)  }
   0xd   : > { %977 = vmatpush3.bf16.msra.mxu0 (!%p206_p3), %v1099_v6  ;;  %v1108_v15 = vld [vmem:[%s1383_s1 + $0x98] sm:$0xff] (!%p206_p3)   ;;  %v1112_v19 = vld [vmem:[%s1383_s1 + $0xa0] sm:$0xff] (!%p206_p3)   ;;  %v1116_v23 = vld [vmem:[%s1383_s1 + $0xa8] sm:$0xff] (!%p206_p3)  }
   0xe   : > { %999 = vmatpush3.bf16.msra.mxu1 %v1100_v7  ;;  %978 = vmatprep.subr.bf16.mxu0 %v1101_v8  ;;  %s1393_s6 = smov (!%p237_p4, %s913_s6), 7  ;;  %v1117_v24 = vld [vmem:[%s1383_s1 + $0x70] sm:$0xff]   ;;  %v1121_v28 = vld [vmem:[%s1383_s1 + $0x78] sm:$0xff]   ;;  %v1131_v37 = vld [vmem:[%s1383_s1 + $0x100] sm:$0xff]  }
   0xf   : > { %1000 = vmatprep.subr.bf16.mxu1 %v1102_v9  ;;  %v1118_v25 = vld [vmem:[%s1383_s1 + $0xf0] sm:$0xff]   ;;  %s1064_s9 = smul.u32 20, %s1393_s6  ;;  %v1122_v29 = vld [vmem:[%s1383_s1 + $0xf8] sm:$0xff]   ;;  %v1132_v38 = vld [vmem:[%s1383_s1 + $0x108] sm:$0xff]  }
  0x10   : > { %v1119_v26 = vld [vmem:[%s1383_s1 + $0x30] sm:$0xff]   ;;  %v1123_v30 = vld [vmem:[%s1383_s1 + $0x38] sm:$0xff]  }
  0x11   : > { %979 = vmatpush3.bf16.msra.mxu0 %v1103_v10  ;;  %v1120_v27 = vld [vmem:[%s1383_s1 + $0xb0] sm:$0xff]   ;;  %s241_s23 = scalar_lea.vmem %s1382_s0, %s1064_s9  ;;  %v1124_v31 = vld [vmem:[%s1383_s1 + $0xb8] sm:$0xff]  }
  0x12   : > { %1001 = vmatpush3.bf16.msra.mxu1 %v1104_v11  ;;  %980 = vmatprep.subr.bf16.mxu0 %v1105_v12  ;;  %v1125_v32 = vld [vmem:[%s241_s23] ss:$20 sps:$4 sm:$0xff]   ;;  %v1127_v33 = vld [vmem:[%s241_s23 + $0x4] ss:$20 sps:$4 sm:$0xff]   ;;  %v1128_v35 = vld [vmem:[%s241_s23 + $0x8] ss:$20 sps:$4 sm:$0xff]  }
  0x13   : > { %1002 = vmatprep.subr.bf16.mxu1 %v1106_v13  ;;  %v1130_v36 = vld [vmem:[%s241_s23 + $0xc] ss:$20 sps:$4 sm:$0xff]   ;;  %606 = vmatprep.mubr.bf16.mxu0 %v1127_v33  ;;  %v1133_v39 = vld [vmem:[%s1383_s1 + $0x110] sm:$0xff]   ;;  %v1134_v40 = vld [vmem:[%s1383_s1 + $0x118] sm:$0xff]  }
  0x14   : > { %647 = vmatprep.mubr.bf16.mxu1 %v1130_v36  ;;  %v1135_v41 = vld [vmem:[%s241_s23 + $0x10] ss:$20 sps:$4 sm:$0xff]  }
  0x15   : > { %981 = vmatpush3.bf16.msra.mxu0 %v1107_v14 }
  0x16   : > { %1003 = vmatpush3.bf16.msra.mxu1 %v1108_v15  ;;  %982 = vmatprep.subr.bf16.mxu0 %v1109_v16 }
  0x17   : > { %1004 = vmatprep.subr.bf16.mxu1 %v1110_v17 }
  0x19   : > { %983 = vmatpush3.bf16.msra.mxu0 %v1111_v18 }
  0x1a   : > { %1005 = vmatpush3.bf16.msra.mxu1 %v1112_v19  ;;  %984 = vmatprep.subr.bf16.mxu0 %v1113_v20 }
  0x1b   : > { %1006 = vmatprep.subr.bf16.mxu1 %v1114_v21 }
  0x1d   : > { %985 = vmatpush3.bf16.msra.mxu0 %v1115_v22 }
  0x1e   : > { %1007 = vmatpush3.bf16.msra.mxu1 %v1116_v23  ;;  %986 = vmatprep.subr.bf16.mxu0 %v1117_v24 }
  0x1f   : > { %1008 = vmatprep.subr.bf16.mxu1 %v1118_v25 }
  0x21   : > { %987 = vmatpush3.bf16.msra.mxu0 %v1119_v26 }
  0x22   : > { %1009 = vmatpush3.bf16.msra.mxu1 %v1120_v27  ;;  %988 = vmatprep.subr.bf16.mxu0 %v1121_v28 }
  0x23   : > { %1010 = vmatprep.subr.bf16.mxu1 %v1122_v29 }
  0x25   : > { %989 = vmatpush3.bf16.msra.mxu0 %v1123_v30 }
  0x26   : > { %1011 = vmatpush3.bf16.msra.mxu1 %v1124_v31  ;;  %1032 = vmatprep.subr.bf16.mxu0 %v1168_v34 }
  0x28   : > { %607 = vmatmul.mubr.bf16.vlgmr.msra.gmra.mrb[0].mxu0 %v1125_v32 }
  0x29   : > { %648 = vmatmul.mubr.bf16.vlgmr.msra.gmra.mrb[0].mxu1 %v1128_v35  ;;  %1033 = vmatpush3.bf16.msra.mxu0 %v1131_v37 }
  0x2a   : > { %1034 = vmatprep.subr.bf16.mxu0 %v1168_v34  ;;  %1040 = vmatprep.mubr.msk.bf16.mxu0 %vm1169_vm0, %v1168_v34 }
  0x2d   : > { %1035 = vmatpush3.bf16.msra.mxu0 %v1132_v38 }
  0x2e   : > { %1036 = vmatprep.subr.bf16.mxu0 %v1168_v34 }
  0x31   : > { %1037 = vmatpush3.bf16.msra.mxu0 %v1133_v39 }
  0x32   : > { %1038 = vmatprep.subr.bf16.mxu0 %v1168_v34 }
  0x35   : > { %1039 = vmatpush3.bf16.msra.mxu0 %v1134_v40 }
  0x38   : > { %1041 = vmatmul.mubr.msk.bf16.vlgmr.msra.gmra.mrb[4].mxu0 %vm570_vm1, %v1135_v41 }
  0xfb   : > { %v990_v42 = vpop.f32.mrb[0].mxu0 }
  0xfc   : > { %v1012_v43 = vpop.f32.mrb[0].mxu1  ;;  %v991_v44 = vpop.f32.mrb[1].mxu0 }
  0xfd   : > { %v992_v45 = vadd.f32 %v991_v44, %v990_v42  ;;  %v1013_v46 = vpop.f32.mrb[1].mxu1  ;;  %v993_v47 = vpop.f32.mrb[2].mxu0 }
  0xfe   : > { %v1014_v48 = vadd.f32 %v1013_v46, %v1012_v43  ;;  %v1015_v49 = vpop.f32.mrb[2].mxu1  ;;  %v994_v50 = vpop.f32.mrb[3].mxu0 }
  0xff   : > { %v995_v51 = vadd.f32 %v994_v50, %v993_v47  ;;  %v1016_v52 = vpop.f32.mrb[3].mxu1 }
 0x100   : > { %v1017_v53 = vadd.f32 %v1016_v52, %v1015_v49  ;;  %v650_v54 = vadd.f32 %v1014_v48, %v992_v45 }
 0x102   : > { %v653_v55 = vadd.f32 %v1017_v53, %v995_v51 }
 0x108   : > { %700 = sbr.rel (%p957_p5) target bundleno = 273 (0x111), region = 44 }
 0x10b   : > { %v690_v56 = vpop.f32.mrb[4].mxu0 }
 0x10c   : > { %v691_v57 = vadd.f32 %v690_v56, %v650_v54  ;;  %v1042_v58 = vpop.f32.mrb[5].mxu0 }
 0x10d   : > { %v693_v59 = vpop.f32.mrb[6].mxu0 }
 0x10e   : > { %v694_v60 = vadd.f32 %v693_v59, %v653_v55  ;;  %v1043_v61 = vpop.f32.mrb[7].mxu0  ;;  %701 = vst [vmem:[#allocation2] sm:$0xff] (!%p957_p5), %v691_v57 }
 0x110   : > { %702 = vst [vmem:[#allocation2 + $0x8] sm:$0xff] %v694_v60 }
 0x111 PF: > { %p958_p6 = scmp.eq.s32.totalorder %s1158_s18, 0 }
 0x113   : > { %706 = sbr.rel (%p958_p6) target bundleno = 283 (0x11b), region = 48 }
 0x117   : > { %v707_v62 = vld [vmem:[#allocation2] sm:$0xff] (!%p958_p6)  ;;  %v708_v63 = vld [vmem:[#allocation2 + $0x8] sm:$0xff] (!%p958_p6) }
 0x118   : > { %v709_v0 = vmax.f32 (!%p958_p6), %v707_v62, %v691_v57  ;;  %v710_v1 = vmax.f32 (!%p958_p6), %v708_v63, %v694_v60 }
 0x11a   : > { %711 = vst [vmem:[#allocation2] sm:$0xff] %v709_v0  ;;  %712 = vst [vmem:[#allocation2 + $0x8] sm:$0xff] %v710_v1 }
 0x11b PF: > { %p959_p7 = scmp.ne.s32.totalorder %s1158_s18, 3 }
 0x11c   : > { %v1136_v2 = vld [vmem:[%s1385_s3] sm:$0xff] (!%p959_p7)   ;;  %v1170_v3 = vmov (!%p959_p7), 0.0   ;;  %v1137_v4 = vld [vmem:[%s1385_s3 + $0x8] sm:$0xff] (!%p959_p7)   ;;  %vm1171_vm2 = vmmov (!%p959_p7), 0   ;;  %v1138_v5 = vld [vmem:[%s1385_s3 + $0x10] sm:$0xff] (!%p959_p7)  }
 0x11d   : > { %716 = sbr.rel (%p959_p7) target bundleno = 536 (0x218), region = 52  ;;  %1044 = vmatprep.subr.bf16.mxu0 (!%p959_p7), %v1170_v3  ;;  %1060 = vmatprep.mubr.msk.bf16.mxu0 (!%p959_p7), %vm1171_vm2, %v1170_v3  ;;  %v1139_v6 = vld [vmem:[%s1385_s3 + $0x18] sm:$0xff] (!%p959_p7)   ;;  %v1140_v7 = vld [vmem:[%s1385_s3 + $0x20] sm:$0xff] (!%p959_p7)   ;;  %v1141_v8 = vld [vmem:[%s1385_s3 + $0x28] sm:$0xff] (!%p959_p7)  }
 0x11e   : > { %1045 = vmatpush3.bf16.msra.mxu0 (!%p959_p7), %v1136_v2  ;;  %v960_v11 = vld [vmem:[%s1384_s2] ss:$0 sm:$0xff] (!%p959_p7)  ;;  %v1142_v14 = vld [vmem:[%s1385_s3 + $0x30] sm:$0xff] (!%p959_p7)   ;;  %v1143_v17 = vld [vmem:[%s1385_s3 + $0x38] sm:$0xff] (!%p959_p7)  }
 0x11f   : > { %1046 = vmatprep.subr.bf16.mxu0 (!%p959_p7), %v1170_v3  ;;  %v961_v19 = vld [vmem:[%s1386_s4] ss:$0 sm:$0xff] (!%p959_p7) }
 0x121   : > { %v717_v9 = vld [vmem:[#allocation2] sm:$0xff] (!%p959_p7)  ;;  %v718_v10 = vld [vmem:[#allocation2 + $0x8] sm:$0xff] (!%p959_p7) }
 0x122   : > { %1047 = vmatpush3.bf16.msra.mxu0 (!%p959_p7), %v1137_v4  ;;  %v726_v12 = vadd.f32 (!%p959_p7), %v960_v11, %v717_v9  ;;  %v727_v13 = vadd.f32 (!%p959_p7), %v960_v11, %v718_v10 }
 0x123   : > { %1048 = vmatprep.subr.bf16.mxu0 (!%p959_p7), %v1170_v3 }
 0x124   : > { %v728_v15 = vmax.f32 %v726_v12, 0.0  ;;  %v729_v16 = vmax.f32 %v727_v13, 0.0 }
 0x126   : > { %1049 = vmatpush3.bf16.msra.mxu0 %v1138_v5  ;;  %v730_v18 = vpack.c.bf16 %v729_v16, %v728_v15 }
 0x127   : > { %1050 = vmatprep.subr.bf16.mxu0 %v1170_v3 }
 0x12a   : > { %1051 = vmatpush3.bf16.msra.mxu0 %v1139_v6 }
 0x12b   : > { %1052 = vmatprep.subr.bf16.mxu0 %v1170_v3 }
 0x12e   : > { %1053 = vmatpush3.bf16.msra.mxu0 %v1140_v7 }
 0x12f   : > { %1054 = vmatprep.subr.bf16.mxu0 %v1170_v3 }
 0x132   : > { %1055 = vmatpush3.bf16.msra.mxu0 %v1141_v8 }
 0x133   : > { %1056 = vmatprep.subr.bf16.mxu0 %v1170_v3 }
 0x136   : > { %1057 = vmatpush3.bf16.msra.mxu0 %v1142_v14 }
 0x137   : > { %1058 = vmatprep.subr.bf16.mxu0 %v1170_v3 }
 0x13a   : > { %1059 = vmatpush3.bf16.msra.mxu0 %v1143_v17 }
 0x13d   : > { %1061 = vmatmul.mubr.bf16.vlgmr.msra.gmra.mrb[0].mxu0 %v730_v18 }
 0x210   : > { %v836_v20 = vpop.f32.mrb[0].mxu0 }
 0x211   : > { %v837_v21 = vadd.f32 %v961_v19, %v836_v20  ;;  %v1062_v22 = vpop.f32.mrb[1].mxu0 }
 0x212   : > { %v839_v23 = vpop.f32.mrb[2].mxu0 }
 0x213   : > { %v843_v24 = vmax.f32 %v837_v21, 0.0  ;;  %v840_v25 = vadd.f32 %v961_v19, %v839_v23  ;;  %v1063_v26 = vpop.f32.mrb[3].mxu0 }
 0x215   : > { %845 = vst [vmem:[%s1387_s5] sm:$0xff] %v843_v24  ;;  %v844_v27 = vmax.f32 %v840_v25, 0.0 }
 0x217   : > { %846 = vst [vmem:[%s1387_s5 + $0x8] sm:$0xff] %v844_v27 }
 0x218 PF: > { %s15_s20 = sadd.s32 1, %s1166_s20   ;;  %s1388_s18 = smov %s1162_s19 }
 0x219   : > { %p12_p8 = scmp.ge.s32.totalorder %s15_s20, 6   ;;  %s1389_s19 = smov %s1391_s21 }
 0x21b   :  { %14 = sbr.rel (!%p12_p8) target bundleno = 2 (0x2), region = 82 }

</bundles_post_ra>
